<compile_context>
chip_gen: v5e
topology: v5e:2x2
jax: 0.10.0
libtpu: 0.0.40
codegen_flags: <defaults>
</compile_context>

<pallas_src>
import functools

import jax
import jax.numpy as jnp
from jax import lax
from jax.experimental import pallas as pl
from jax.experimental.pallas import tpu as pltpu


def _sigmoid(x):
    # Exact tanh-form sigmoid: runs on the EUP slot, no VPU divide.
    return 0.5 * (jnp.tanh(0.5 * x) + 1.0)


def _reverse_time_blocks(a, T, B):
    """Reverse the time axis of a (T*B, C) time-major-flattened array.

    Built from B-row (sublane-tile aligned when B % 8 == 0) slices + one concatenate so
    it lowers with plain slice/concat ops; it is hoisted, one-time work outside the
    serial recurrence.
    """
    return jnp.concatenate([a[(T - 1 - t) * B:(T - t) * B] for t in range(T)], axis=0)


def _gru_bidir_kernel(T, B, H,
                      x_ref,      # (T*B, I)   time-major flattened input (matmul dtype)
                      h0_ref,     # (2, B, H)  initial hidden (fwd, bwd), f32
                      wih_ref,    # (I, 6H)    fused input weights, gate-major cols (mm dtype)
                      bih_ref,    # (1, 6H)    f32
                      whh_ref,    # (2H, 6H)   block-diag fused recurrent weights (mm dtype)
                      bhh_ref,    # (1, 6H)    f32
                      wfc_ref,    # (1, 2H)    fc weights [fwd | bwd], f32
                      bfc_ref,    # (1, 1)     f32
                      out_ref,    # (T*B, 2H)  combined GRU output slab, f32
                      final_ref,  # (T*B, 1)   sigmoid(fc(output)), f32
                      hn_ref,     # (2, B, H)  final hidden, f32
                      hist_ref):  # (T*B, 2H)  VMEM scratch: raw per-step h_cat
    H2, H4, H6 = 2 * H, 4 * H, 6 * H
    f32 = jnp.float32

    # ---- Hoisted input projection: ONE MXU matmul covers every timestep and both
    # directions (bf16 operands, f32 accumulate).
    gi_all = (jnp.dot(x_ref[...], wih_ref[...], preferred_element_type=f32)
              + bih_ref[...])                                        # (T*B, 6H) f32

    # ---- Hoisted gi select (review item): forward gate columns read timestep t,
    # backward gate columns read timestep T-1-t. One vectorized select outside the
    # serial loop; the loop then only takes an aligned B-row slice per step.
    col = lax.broadcasted_iota(jnp.int32, (T * B, H6), 1)
    fwd_cols = (col % H2) < H                  # gate-major: [r_f r_b z_f z_b n_f n_b]
    gi_sel = jnp.where(fwd_cols, gi_all, _reverse_time_blocks(gi_all, T, B))

    whh = whh_ref[...]                                               # (2H, 6H) mm dtype
    bhh = bhh_ref[...]                                               # (1, 6H)  f32
    mm_dtype = whh.dtype

    # Carried state for both directions: [h_f | h_b] -> (B, 2H), kept in f32.
    h_cat = jnp.concatenate([h0_ref[0], h0_ref[1]], axis=-1)

    for t in range(T):          # static unroll: T small & known at trace time
        gi = gi_sel[t * B:(t + 1) * B, :]                            # (B, 6H)
        # Single fused recurrent matmul for both directions (block-diagonal W_hh).
        gh = (jnp.dot(h_cat.astype(mm_dtype), whh, preferred_element_type=f32)
              + bhh)                                                 # (B, 6H) f32
        r = _sigmoid(gi[:, 0:H2] + gh[:, 0:H2])                      # [r_f | r_b]
        z = _sigmoid(gi[:, H2:H4] + gh[:, H2:H4])                    # [z_f | z_b]
        n = jnp.tanh(gi[:, H4:H6] + r * gh[:, H4:H6])                # [n_f | n_b]
        h_cat = (1.0 - z) * n + z * h_cat                            # (B, 2H)
        # Full-width per-step store (no [:, :H] slicing) bounds vreg live ranges.
        hist_ref[t * B:(t + 1) * B, :] = h_cat

    # Final hidden state (last step of each direction), matches PyTorch layout.
    hn_ref[0] = h_cat[:, :H]
    hn_ref[1] = h_cat[:, H:]

    # ---- Epilogue: one vectorized time-flip of the backward half + single bulk store.
    hist = hist_ref[...]                                             # (T*B, 2H)
    lane = lax.broadcasted_iota(jnp.int32, (T * B, H2), 1)
    out_cat = jnp.where(lane < H, hist, _reverse_time_blocks(hist, T, B))
    out_ref[...] = out_cat

    # FC epilogue: fused reduce over the combined slab + sigmoid (EUP).
    logits = (jnp.sum(out_cat * wfc_ref[...], axis=-1, keepdims=True)
              + bfc_ref[...])                                        # (T*B, 1)
    final_ref[...] = _sigmoid(logits)


# ---------------- weight preparation (done once, outside the kernel) ----------------
def _fuse_gate_columns(wf, wb, H):
    """Interleave per-gate column blocks -> [r_f, r_b, z_f, z_b, n_f, n_b]."""
    parts = []
    for g in range(3):
        parts.append(wf[:, g * H:(g + 1) * H])
        parts.append(wb[:, g * H:(g + 1) * H])
    return jnp.concatenate(parts, axis=1)


def prepare_fused_params(params, H):
    wih = _fuse_gate_columns(params["wih_f"], params["wih_b"], H)   # (I, 6H)
    bih = _fuse_gate_columns(params["bih_f"], params["bih_b"], H)   # (1, 6H)
    bhh = _fuse_gate_columns(params["bhh_f"], params["bhh_b"], H)   # (1, 6H)

    zero = jnp.zeros((H, H), jnp.float32)
    blocks = []
    for g in range(3):
        bf = params["whh_f"][:, g * H:(g + 1) * H]                  # (H, H)
        bb = params["whh_b"][:, g * H:(g + 1) * H]                  # (H, H)
        top = jnp.concatenate([bf, zero], axis=1)                   # h_f -> fwd gate only
        bot = jnp.concatenate([zero, bb], axis=1)                   # h_b -> bwd gate only
        blocks.append(jnp.concatenate([top, bot], axis=0))          # (2H, 2H)
    whh = jnp.concatenate(blocks, axis=1)                           # (2H, 6H)

    wfc = jnp.concatenate([params["wfc_f"], params["wfc_b"]], axis=1)  # (1, 2H)
    return {"wih": wih, "bih": bih, "whh": whh, "bhh": bhh,
            "wfc": wfc, "bfc": params["bfc"]}


# ---------------- wrapper ----------------
@functools.partial(jax.jit, static_argnames=("matmul_dtype",))
def answer_encoder_rnn_forward(x, hidden, fused, matmul_dtype=jnp.bfloat16):
    """x: (B, T, I), hidden: (2, B, H). Returns (final, output, hidden_n) like the module."""
    B, T, I = x.shape
    H = hidden.shape[-1]
    H2 = 2 * H

    # Time-major flattened input: rows are (t * B + b).
    # TODO(synk): at production, fold this transpose into a time-chunked BlockSpec
    # index_map instead of paying a separate XLA transpose of x.
    x_tm = jnp.transpose(x, (1, 0, 2)).reshape(T * B, I).astype(matmul_dtype)

    # bf16 weights halve projection/recurrent weight VMEM + DMA; biases stay f32.
    wih = fused["wih"].astype(matmul_dtype)
    whh = fused["whh"].astype(matmul_dtype)

    kernel = functools.partial(_gru_bidir_kernel, T, B, H)
    n_in = 8
    out_flat, final_flat, hn = pl.pallas_call(
        kernel,
        out_shape=(
            jax.ShapeDtypeStruct((T * B, H2), jnp.float32),
            jax.ShapeDtypeStruct((T * B, 1), jnp.float32),
            jax.ShapeDtypeStruct((2, B, H), jnp.float32),
        ),
        in_specs=[pl.BlockSpec(memory_space=pltpu.MemorySpace.VMEM)] * n_in,
        out_specs=tuple(pl.BlockSpec(memory_space=pltpu.MemorySpace.VMEM)
                        for _ in range(3)),
        scratch_shapes=[pltpu.VMEM((T * B, H2), jnp.float32)],
    )(x_tm, hidden, wih, fused["bih"], whh, fused["bhh"], fused["wfc"], fused["bfc"])

    output = jnp.transpose(out_flat.reshape(T, B, H2), (1, 0, 2))        # (B, T, 2H)
    final = jnp.transpose(final_flat.reshape(T, B), (1, 0))[..., None]   # (B, T, 1)
    return final, output, hn


# ---------------- pure-JAX reference for verification ----------------
def _sigmoid_ref(x):
    return 1.0 / (1.0 + jnp.exp(-x))


def _gru_cell_ref(x_t, h, wih, whh, bih, bhh, H):
    gi = x_t @ wih + bih
    gh = h @ whh + bhh
    r = _sigmoid_ref(gi[:, :H] + gh[:, :H])
    z = _sigmoid_ref(gi[:, H:2 * H] + gh[:, H:2 * H])
    n = jnp.tanh(gi[:, 2 * H:] + r * gh[:, 2 * H:])
    return (1.0 - z) * n + z * h


def answer_encoder_rnn_reference(x, hidden, params):
    B, T, I = x.shape
    H = hidden.shape[-1]
    h_f, h_b = hidden[0], hidden[1]
    outs_f, outs_b = [], []
    for t in range(T):
        h_f = _gru_cell_ref(x[:, t], h_f, params["wih_f"], params["whh_f"],
                            params["bih_f"], params["bhh_f"], H)
        outs_f.append(h_f)
    for t in range(T - 1, -1, -1):
        h_b = _gru_cell_ref(x[:, t], h_b, params["wih_b"], params["whh_b"],
                            params["bih_b"], params["bhh_b"], H)
        outs_b.append(h_b)
    out_f = jnp.stack(outs_f, axis=1)                   # (B, T, H)
    out_b = jnp.stack(outs_b[::-1], axis=1)             # (B, T, H)
    output = jnp.concatenate([out_f, out_b], axis=-1)   # (B, T, 2H)
    logits = (out_f @ params["wfc_f"].reshape(H, 1)
              + out_b @ params["wfc_b"].reshape(H, 1)
              + params["bfc"].reshape(1, 1, 1))
    final = _sigmoid_ref(logits)
    hn = jnp.stack([h_f, h_b], axis=0)
    return final, output, hn


def init_params(key, input_size, hidden_size):
    """Same shapes as nn.GRU(bidirectional) + nn.Linear(2H,1), pre-transposed."""
    H, I = hidden_size, input_size
    k = 1.0 / jnp.sqrt(jnp.float32(H))
    keys = jax.random.split(key, 11)
    u = lambda kk, shape: jax.random.uniform(kk, shape, jnp.float32, -k, k)
    return {
        "wih_f": u(keys[0], (I, 3 * H)), "whh_f": u(keys[1], (H, 3 * H)),
        "bih_f": u(keys[2], (1, 3 * H)), "bhh_f": u(keys[3], (1, 3 * H)),
        "wih_b": u(keys[4], (I, 3 * H)), "whh_b": u(keys[5], (H, 3 * H)),
        "bih_b": u(keys[6], (1, 3 * H)), "bhh_b": u(keys[7], (1, 3 * H)),
        "wfc_f": u(keys[8], (1, H)), "wfc_b": u(keys[9], (1, H)),
        "bfc": u(keys[10], (1, 1)),
    }


if __name__ == "__main__":
    # Review item: B=8 fills all 8 sublanes of every per-step vreg (B=2 left 3/4 of
    # each vreg and most of the MXU M dimension idle). Production callers should pack
    # batch_size=64 (or more) sequences per call.
    B, T, I, H = 8, 8, 16, 32  # batch, seq, input_size, hidden_size

    key = jax.random.PRNGKey(0)
    kx, kp = jax.random.split(key)
    x = jax.random.normal(kx, (B, T, I), dtype=jnp.float32)
    hidden0 = jnp.zeros((2, B, H), dtype=jnp.float32)  # initHidden()
    params = init_params(kp, I, H)
    fused = prepare_fused_params(params, H)

    final_r, output_r, hn_r = answer_encoder_rnn_reference(x, hidden0, params)

    # f32-matmul path: tight check against the pure-JAX reference.
    final, output, hn = jax.block_until_ready(
        answer_encoder_rnn_forward(x, hidden0, fused, matmul_dtype=jnp.float32))
    assert final.shape == (B, T, 1) and output.shape == (B, T, 2 * H) and hn.shape == (2, B, H)
    assert jnp.allclose(final, final_r, atol=2e-5), "final mismatch (f32)"
    assert jnp.allclose(output, output_r, atol=2e-5), "output mismatch (f32)"
    assert jnp.allclose(hn, hn_r, atol=2e-5), "hidden mismatch (f32)"

    # bf16-operand / f32-accumulate path (recommended production MXU config):
    # carry and gate math stay f32, so only operand-rounding error accumulates.
    final_b, output_b, hn_b = jax.block_until_ready(
        answer_encoder_rnn_forward(x, hidden0, fused, matmul_dtype=jnp.bfloat16))
    assert jnp.allclose(final_b, final_r, atol=5e-2), "final mismatch (bf16)"
    assert jnp.allclose(output_b, output_r, atol=5e-2), "output mismatch (bf16)"
    assert jnp.allclose(hn_b, hn_r, atol=5e-2), "hidden mismatch (bf16)"

    print("KERNEL_OK")
</pallas_src>

<mosaic_0001>
module attributes {stable_mosaic.version = 11 : i64} {
  func.func @_gru_bidir_kernel(%arg0: memref<64x16xf32, #tpu.memory_space<vmem>>, %arg1: memref<2x8x32xf32, #tpu.memory_space<vmem>>, %arg2: memref<16x192xf32, #tpu.memory_space<vmem>>, %arg3: memref<1x192xf32, #tpu.memory_space<vmem>>, %arg4: memref<64x192xf32, #tpu.memory_space<vmem>>, %arg5: memref<1x192xf32, #tpu.memory_space<vmem>>, %arg6: memref<1x64xf32, #tpu.memory_space<vmem>>, %arg7: memref<1x1xf32, #tpu.memory_space<vmem>>, %arg8: memref<64x64xf32, #tpu.memory_space<vmem>>, %arg9: memref<64x1xf32, #tpu.memory_space<vmem>>, %arg10: memref<2x8x32xf32, #tpu.memory_space<vmem>>, %arg11: memref<64x64xf32, #tpu.memory_space<vmem>>) attributes {dimension_semantics = [], scalar_prefetch = 0 : i64, scratch_operands = 1 : i64, tpu.core_type = #tpu.core_type<tc>} {
    %c0 = arith.constant 0 : index
    %c0_0 = arith.constant 0 : index
    %0 = vector.load %arg0[%c0, %c0_0] : memref<64x16xf32, #tpu.memory_space<vmem>>, vector<64x16xf32>
    %c0_1 = arith.constant 0 : index
    %c0_2 = arith.constant 0 : index
    %1 = vector.load %arg2[%c0_1, %c0_2] : memref<16x192xf32, #tpu.memory_space<vmem>>, vector<16x192xf32>
    %cst = arith.constant dense<0.000000e+00> : vector<64x192xf32>
    %2 = tpu.matmul %0, %1, %cst {dimension_numbers = #tpu.dot_dimension_numbers<[1], [0], [0], [1], [0, 0, 1, 1], [], []>} : vector<64x16xf32>, vector<16x192xf32>, vector<64x192xf32> -> vector<64x192xf32>
    %c0_3 = arith.constant 0 : index
    %c0_4 = arith.constant 0 : index
    %3 = vector.load %arg3[%c0_3, %c0_4] : memref<1x192xf32, #tpu.memory_space<vmem>>, vector<1x192xf32>
    %4 = vector.broadcast %3 : vector<1x192xf32> to vector<64x192xf32>
    %5 = arith.addf %2, %4 : vector<64x192xf32>
    %6 = tpu.iota {dimensions = array<i32: 1>} : vector<64x192xi32>
    %c64_i32 = arith.constant 64 : i32
    %c0_i32 = arith.constant 0 : i32
    %7 = arith.cmpi eq, %c64_i32, %c0_i32 : i32
    %c1_i32 = arith.constant 1 : i32
    %8 = arith.select %7, %c1_i32, %c64_i32 : i32
    %9 = vector.broadcast %8 : i32 to vector<64x192xi32>
    %10 = arith.remsi %6, %9 : vector<64x192xi32>
    %c0_i32_5 = arith.constant 0 : i32
    %11 = vector.broadcast %c0_i32_5 : i32 to vector<64x192xi32>
    %12 = arith.cmpi ne, %10, %11 : vector<64x192xi32>
    %c0_i32_6 = arith.constant 0 : i32
    %13 = vector.broadcast %c0_i32_6 : i32 to vector<64x192xi32>
    %14 = arith.cmpi slt, %10, %13 : vector<64x192xi32>
    %c0_i32_7 = arith.constant 0 : i32
    %15 = arith.cmpi slt, %8, %c0_i32_7 : i32
    %16 = vector.broadcast %15 : i1 to vector<64x192xi1>
    %17 = vector.broadcast %16 : vector<64x192xi1> to vector<64x192xi1>
    %18 = arith.xori %14, %17 : vector<64x192xi1>
    %19 = arith.andi %18, %12 : vector<64x192xi1>
    %20 = vector.broadcast %8 : i32 to vector<64x192xi32>
    %21 = arith.addi %10, %20 : vector<64x192xi32>
    %22 = arith.select %19, %21, %10 : vector<64x192xi1>, vector<64x192xi32>
    %c32_i32 = arith.constant 32 : i32
    %23 = vector.broadcast %c32_i32 : i32 to vector<64x192xi32>
    %24 = arith.cmpi slt, %22, %23 : vector<64x192xi32>
    %25 = vector.extract_strided_slice %5 {offsets = [56, 0], sizes = [8, 192], strides = [1, 1]} : vector<64x192xf32> to vector<8x192xf32>
    %26 = vector.extract_strided_slice %5 {offsets = [48, 0], sizes = [8, 192], strides = [1, 1]} : vector<64x192xf32> to vector<8x192xf32>
    %27 = vector.extract_strided_slice %5 {offsets = [40, 0], sizes = [8, 192], strides = [1, 1]} : vector<64x192xf32> to vector<8x192xf32>
    %28 = vector.extract_strided_slice %5 {offsets = [32, 0], sizes = [8, 192], strides = [1, 1]} : vector<64x192xf32> to vector<8x192xf32>
    %29 = vector.extract_strided_slice %5 {offsets = [24, 0], sizes = [8, 192], strides = [1, 1]} : vector<64x192xf32> to vector<8x192xf32>
    %30 = vector.extract_strided_slice %5 {offsets = [16, 0], sizes = [8, 192], strides = [1, 1]} : vector<64x192xf32> to vector<8x192xf32>
    %31 = vector.extract_strided_slice %5 {offsets = [8, 0], sizes = [8, 192], strides = [1, 1]} : vector<64x192xf32> to vector<8x192xf32>
    %32 = vector.extract_strided_slice %5 {offsets = [0, 0], sizes = [8, 192], strides = [1, 1]} : vector<64x192xf32> to vector<8x192xf32>
    %33 = tpu.concatenate %25, %26, %27, %28, %29, %30, %31, %32 in 0 : vector<8x192xf32>, vector<8x192xf32>, vector<8x192xf32>, vector<8x192xf32>, vector<8x192xf32>, vector<8x192xf32>, vector<8x192xf32>, vector<8x192xf32> -> vector<64x192xf32>
    %34 = arith.select %24, %5, %33 : vector<64x192xi1>, vector<64x192xf32>
    %c0_8 = arith.constant 0 : index
    %c0_9 = arith.constant 0 : index
    %35 = vector.load %arg4[%c0_8, %c0_9] : memref<64x192xf32, #tpu.memory_space<vmem>>, vector<64x192xf32>
    %c0_10 = arith.constant 0 : index
    %c0_11 = arith.constant 0 : index
    %36 = vector.load %arg5[%c0_10, %c0_11] : memref<1x192xf32, #tpu.memory_space<vmem>>, vector<1x192xf32>
    %c0_12 = arith.constant 0 : index
    %c0_13 = arith.constant 0 : index
    %c0_14 = arith.constant 0 : index
    %37 = vector.load %arg1[%c0_12, %c0_13, %c0_14] : memref<2x8x32xf32, #tpu.memory_space<vmem>>, vector<1x8x32xf32>
    %38 = vector.shape_cast %37 : vector<1x8x32xf32> to vector<8x32xf32>
    %c1 = arith.constant 1 : index
    %c0_15 = arith.constant 0 : index
    %c0_16 = arith.constant 0 : index
    %39 = vector.load %arg1[%c1, %c0_15, %c0_16] : memref<2x8x32xf32, #tpu.memory_space<vmem>>, vector<1x8x32xf32>
    %40 = vector.shape_cast %39 : vector<1x8x32xf32> to vector<8x32xf32>
    %41 = tpu.concatenate %38, %40 in 1 : vector<8x32xf32>, vector<8x32xf32> -> vector<8x64xf32>
    %42 = vector.extract_strided_slice %34 {offsets = [0, 0], sizes = [8, 192], strides = [1, 1]} : vector<64x192xf32> to vector<8x192xf32>
    %cst_17 = arith.constant dense<0.000000e+00> : vector<8x192xf32>
    %43 = tpu.matmul %41, %35, %cst_17 {dimension_numbers = #tpu.dot_dimension_numbers<[1], [0], [0], [1], [0, 0, 1, 1], [], []>} : vector<8x64xf32>, vector<64x192xf32>, vector<8x192xf32> -> vector<8x192xf32>
    %44 = vector.broadcast %36 : vector<1x192xf32> to vector<8x192xf32>
    %45 = arith.addf %43, %44 : vector<8x192xf32>
    %46 = vector.extract_strided_slice %42 {offsets = [0, 0], sizes = [8, 64], strides = [1, 1]} : vector<8x192xf32> to vector<8x64xf32>
    %47 = vector.extract_strided_slice %45 {offsets = [0, 0], sizes = [8, 64], strides = [1, 1]} : vector<8x192xf32> to vector<8x64xf32>
    %48 = arith.addf %46, %47 : vector<8x64xf32>
    %cst_18 = arith.constant 5.000000e-01 : f32
    %49 = vector.broadcast %cst_18 : f32 to vector<8x64xf32>
    %50 = arith.mulf %49, %48 : vector<8x64xf32>
    %51 = math.tanh %50 : vector<8x64xf32>
    %cst_19 = arith.constant 1.000000e+00 : f32
    %52 = vector.broadcast %cst_19 : f32 to vector<8x64xf32>
    %53 = arith.addf %51, %52 : vector<8x64xf32>
    %cst_20 = arith.constant 5.000000e-01 : f32
    %54 = vector.broadcast %cst_20 : f32 to vector<8x64xf32>
    %55 = arith.mulf %54, %53 : vector<8x64xf32>
    %56 = vector.extract_strided_slice %42 {offsets = [0, 64], sizes = [8, 64], strides = [1, 1]} : vector<8x192xf32> to vector<8x64xf32>
    %57 = vector.extract_strided_slice %45 {offsets = [0, 64], sizes = [8, 64], strides = [1, 1]} : vector<8x192xf32> to vector<8x64xf32>
    %58 = arith.addf %56, %57 : vector<8x64xf32>
    %cst_21 = arith.constant 5.000000e-01 : f32
    %59 = vector.broadcast %cst_21 : f32 to vector<8x64xf32>
    %60 = arith.mulf %59, %58 : vector<8x64xf32>
    %61 = math.tanh %60 : vector<8x64xf32>
    %cst_22 = arith.constant 1.000000e+00 : f32
    %62 = vector.broadcast %cst_22 : f32 to vector<8x64xf32>
    %63 = arith.addf %61, %62 : vector<8x64xf32>
    %cst_23 = arith.constant 5.000000e-01 : f32
    %64 = vector.broadcast %cst_23 : f32 to vector<8x64xf32>
    %65 = arith.mulf %64, %63 : vector<8x64xf32>
    %66 = vector.extract_strided_slice %42 {offsets = [0, 128], sizes = [8, 64], strides = [1, 1]} : vector<8x192xf32> to vector<8x64xf32>
    %67 = vector.extract_strided_slice %45 {offsets = [0, 128], sizes = [8, 64], strides = [1, 1]} : vector<8x192xf32> to vector<8x64xf32>
    %68 = arith.mulf %55, %67 : vector<8x64xf32>
    %69 = arith.addf %66, %68 : vector<8x64xf32>
    %70 = math.tanh %69 : vector<8x64xf32>
    %cst_24 = arith.constant 1.000000e+00 : f32
    %71 = vector.broadcast %cst_24 : f32 to vector<8x64xf32>
    %72 = arith.subf %71, %65 : vector<8x64xf32>
    %73 = arith.mulf %72, %70 : vector<8x64xf32>
    %74 = arith.mulf %65, %41 : vector<8x64xf32>
    %75 = arith.addf %73, %74 : vector<8x64xf32>
    %c0_25 = arith.constant 0 : index
    %c0_26 = arith.constant 0 : index
    %76 = vector.load %arg11[%c0_25, %c0_26] : memref<64x64xf32, #tpu.memory_space<vmem>>, vector<8x64xf32>
    tpu.vector_store %arg11[%c0_25, %c0_26], %75 {strides = array<i32>} : memref<64x64xf32, #tpu.memory_space<vmem>>, vector<8x64xf32>,
    %77 = vector.extract_strided_slice %34 {offsets = [8, 0], sizes = [8, 192], strides = [1, 1]} : vector<64x192xf32> to vector<8x192xf32>
    %cst_27 = arith.constant dense<0.000000e+00> : vector<8x192xf32>
    %78 = tpu.matmul %75, %35, %cst_27 {dimension_numbers = #tpu.dot_dimension_numbers<[1], [0], [0], [1], [0, 0, 1, 1], [], []>} : vector<8x64xf32>, vector<64x192xf32>, vector<8x192xf32> -> vector<8x192xf32>
    %79 = vector.broadcast %36 : vector<1x192xf32> to vector<8x192xf32>
    %80 = arith.addf %78, %79 : vector<8x192xf32>
    %81 = vector.extract_strided_slice %77 {offsets = [0, 0], sizes = [8, 64], strides = [1, 1]} : vector<8x192xf32> to vector<8x64xf32>
    %82 = vector.extract_strided_slice %80 {offsets = [0, 0], sizes = [8, 64], strides = [1, 1]} : vector<8x192xf32> to vector<8x64xf32>
    %83 = arith.addf %81, %82 : vector<8x64xf32>
    %cst_28 = arith.constant 5.000000e-01 : f32
    %84 = vector.broadcast %cst_28 : f32 to vector<8x64xf32>
    %85 = arith.mulf %84, %83 : vector<8x64xf32>
    %86 = math.tanh %85 : vector<8x64xf32>
    %cst_29 = arith.constant 1.000000e+00 : f32
    %87 = vector.broadcast %cst_29 : f32 to vector<8x64xf32>
    %88 = arith.addf %86, %87 : vector<8x64xf32>
    %cst_30 = arith.constant 5.000000e-01 : f32
    %89 = vector.broadcast %cst_30 : f32 to vector<8x64xf32>
    %90 = arith.mulf %89, %88 : vector<8x64xf32>
    %91 = vector.extract_strided_slice %77 {offsets = [0, 64], sizes = [8, 64], strides = [1, 1]} : vector<8x192xf32> to vector<8x64xf32>
    %92 = vector.extract_strided_slice %80 {offsets = [0, 64], sizes = [8, 64], strides = [1, 1]} : vector<8x192xf32> to vector<8x64xf32>
    %93 = arith.addf %91, %92 : vector<8x64xf32>
    %cst_31 = arith.constant 5.000000e-01 : f32
    %94 = vector.broadcast %cst_31 : f32 to vector<8x64xf32>
    %95 = arith.mulf %94, %93 : vector<8x64xf32>
    %96 = math.tanh %95 : vector<8x64xf32>
    %cst_32 = arith.constant 1.000000e+00 : f32
    %97 = vector.broadcast %cst_32 : f32 to vector<8x64xf32>
    %98 = arith.addf %96, %97 : vector<8x64xf32>
    %cst_33 = arith.constant 5.000000e-01 : f32
    %99 = vector.broadcast %cst_33 : f32 to vector<8x64xf32>
    %100 = arith.mulf %99, %98 : vector<8x64xf32>
    %101 = vector.extract_strided_slice %77 {offsets = [0, 128], sizes = [8, 64], strides = [1, 1]} : vector<8x192xf32> to vector<8x64xf32>
    %102 = vector.extract_strided_slice %80 {offsets = [0, 128], sizes = [8, 64], strides = [1, 1]} : vector<8x192xf32> to vector<8x64xf32>
    %103 = arith.mulf %90, %102 : vector<8x64xf32>
    %104 = arith.addf %101, %103 : vector<8x64xf32>
    %105 = math.tanh %104 : vector<8x64xf32>
    %cst_34 = arith.constant 1.000000e+00 : f32
    %106 = vector.broadcast %cst_34 : f32 to vector<8x64xf32>
    %107 = arith.subf %106, %100 : vector<8x64xf32>
    %108 = arith.mulf %107, %105 : vector<8x64xf32>
    %109 = arith.mulf %100, %75 : vector<8x64xf32>
    %110 = arith.addf %108, %109 : vector<8x64xf32>
    %c8 = arith.constant 8 : index
    %c0_35 = arith.constant 0 : index
    %111 = vector.load %arg11[%c8, %c0_35] : memref<64x64xf32, #tpu.memory_space<vmem>>, vector<8x64xf32>
    tpu.vector_store %arg11[%c8, %c0_35], %110 {strides = array<i32>} : memref<64x64xf32, #tpu.memory_space<vmem>>, vector<8x64xf32>,
    %112 = vector.extract_strided_slice %34 {offsets = [16, 0], sizes = [8, 192], strides = [1, 1]} : vector<64x192xf32> to vector<8x192xf32>
    %cst_36 = arith.constant dense<0.000000e+00> : vector<8x192xf32>
    %113 = tpu.matmul %110, %35, %cst_36 {dimension_numbers = #tpu.dot_dimension_numbers<[1], [0], [0], [1], [0, 0, 1, 1], [], []>} : vector<8x64xf32>, vector<64x192xf32>, vector<8x192xf32> -> vector<8x192xf32>
    %114 = vector.broadcast %36 : vector<1x192xf32> to vector<8x192xf32>
    %115 = arith.addf %113, %114 : vector<8x192xf32>
    %116 = vector.extract_strided_slice %112 {offsets = [0, 0], sizes = [8, 64], strides = [1, 1]} : vector<8x192xf32> to vector<8x64xf32>
    %117 = vector.extract_strided_slice %115 {offsets = [0, 0], sizes = [8, 64], strides = [1, 1]} : vector<8x192xf32> to vector<8x64xf32>
    %118 = arith.addf %116, %117 : vector<8x64xf32>
    %cst_37 = arith.constant 5.000000e-01 : f32
    %119 = vector.broadcast %cst_37 : f32 to vector<8x64xf32>
    %120 = arith.mulf %119, %118 : vector<8x64xf32>
    %121 = math.tanh %120 : vector<8x64xf32>
    %cst_38 = arith.constant 1.000000e+00 : f32
    %122 = vector.broadcast %cst_38 : f32 to vector<8x64xf32>
    %123 = arith.addf %121, %122 : vector<8x64xf32>
    %cst_39 = arith.constant 5.000000e-01 : f32
    %124 = vector.broadcast %cst_39 : f32 to vector<8x64xf32>
    %125 = arith.mulf %124, %123 : vector<8x64xf32>
    %126 = vector.extract_strided_slice %112 {offsets = [0, 64], sizes = [8, 64], strides = [1, 1]} : vector<8x192xf32> to vector<8x64xf32>
    %127 = vector.extract_strided_slice %115 {offsets = [0, 64], sizes = [8, 64], strides = [1, 1]} : vector<8x192xf32> to vector<8x64xf32>
    %128 = arith.addf %126, %127 : vector<8x64xf32>
    %cst_40 = arith.constant 5.000000e-01 : f32
    %129 = vector.broadcast %cst_40 : f32 to vector<8x64xf32>
    %130 = arith.mulf %129, %128 : vector<8x64xf32>
    %131 = math.tanh %130 : vector<8x64xf32>
    %cst_41 = arith.constant 1.000000e+00 : f32
    %132 = vector.broadcast %cst_41 : f32 to vector<8x64xf32>
    %133 = arith.addf %131, %132 : vector<8x64xf32>
    %cst_42 = arith.constant 5.000000e-01 : f32
    %134 = vector.broadcast %cst_42 : f32 to vector<8x64xf32>
    %135 = arith.mulf %134, %133 : vector<8x64xf32>
    %136 = vector.extract_strided_slice %112 {offsets = [0, 128], sizes = [8, 64], strides = [1, 1]} : vector<8x192xf32> to vector<8x64xf32>
    %137 = vector.extract_strided_slice %115 {offsets = [0, 128], sizes = [8, 64], strides = [1, 1]} : vector<8x192xf32> to vector<8x64xf32>
    %138 = arith.mulf %125, %137 : vector<8x64xf32>
    %139 = arith.addf %136, %138 : vector<8x64xf32>
    %140 = math.tanh %139 : vector<8x64xf32>
    %cst_43 = arith.constant 1.000000e+00 : f32
    %141 = vector.broadcast %cst_43 : f32 to vector<8x64xf32>
    %142 = arith.subf %141, %135 : vector<8x64xf32>
    %143 = arith.mulf %142, %140 : vector<8x64xf32>
    %144 = arith.mulf %135, %110 : vector<8x64xf32>
    %145 = arith.addf %143, %144 : vector<8x64xf32>
    %c16 = arith.constant 16 : index
    %c0_44 = arith.constant 0 : index
    %146 = vector.load %arg11[%c16, %c0_44] : memref<64x64xf32, #tpu.memory_space<vmem>>, vector<8x64xf32>
    tpu.vector_store %arg11[%c16, %c0_44], %145 {strides = array<i32>} : memref<64x64xf32, #tpu.memory_space<vmem>>, vector<8x64xf32>,
    %147 = vector.extract_strided_slice %34 {offsets = [24, 0], sizes = [8, 192], strides = [1, 1]} : vector<64x192xf32> to vector<8x192xf32>
    %cst_45 = arith.constant dense<0.000000e+00> : vector<8x192xf32>
    %148 = tpu.matmul %145, %35, %cst_45 {dimension_numbers = #tpu.dot_dimension_numbers<[1], [0], [0], [1], [0, 0, 1, 1], [], []>} : vector<8x64xf32>, vector<64x192xf32>, vector<8x192xf32> -> vector<8x192xf32>
    %149 = vector.broadcast %36 : vector<1x192xf32> to vector<8x192xf32>
    %150 = arith.addf %148, %149 : vector<8x192xf32>
    %151 = vector.extract_strided_slice %147 {offsets = [0, 0], sizes = [8, 64], strides = [1, 1]} : vector<8x192xf32> to vector<8x64xf32>
    %152 = vector.extract_strided_slice %150 {offsets = [0, 0], sizes = [8, 64], strides = [1, 1]} : vector<8x192xf32> to vector<8x64xf32>
    %153 = arith.addf %151, %152 : vector<8x64xf32>
    %cst_46 = arith.constant 5.000000e-01 : f32
    %154 = vector.broadcast %cst_46 : f32 to vector<8x64xf32>
    %155 = arith.mulf %154, %153 : vector<8x64xf32>
    %156 = math.tanh %155 : vector<8x64xf32>
    %cst_47 = arith.constant 1.000000e+00 : f32
    %157 = vector.broadcast %cst_47 : f32 to vector<8x64xf32>
    %158 = arith.addf %156, %157 : vector<8x64xf32>
    %cst_48 = arith.constant 5.000000e-01 : f32
    %159 = vector.broadcast %cst_48 : f32 to vector<8x64xf32>
    %160 = arith.mulf %159, %158 : vector<8x64xf32>
    %161 = vector.extract_strided_slice %147 {offsets = [0, 64], sizes = [8, 64], strides = [1, 1]} : vector<8x192xf32> to vector<8x64xf32>
    %162 = vector.extract_strided_slice %150 {offsets = [0, 64], sizes = [8, 64], strides = [1, 1]} : vector<8x192xf32> to vector<8x64xf32>
    %163 = arith.addf %161, %162 : vector<8x64xf32>
    %cst_49 = arith.constant 5.000000e-01 : f32
    %164 = vector.broadcast %cst_49 : f32 to vector<8x64xf32>
    %165 = arith.mulf %164, %163 : vector<8x64xf32>
    %166 = math.tanh %165 : vector<8x64xf32>
    %cst_50 = arith.constant 1.000000e+00 : f32
    %167 = vector.broadcast %cst_50 : f32 to vector<8x64xf32>
    %168 = arith.addf %166, %167 : vector<8x64xf32>
    %cst_51 = arith.constant 5.000000e-01 : f32
    %169 = vector.broadcast %cst_51 : f32 to vector<8x64xf32>
    %170 = arith.mulf %169, %168 : vector<8x64xf32>
    %171 = vector.extract_strided_slice %147 {offsets = [0, 128], sizes = [8, 64], strides = [1, 1]} : vector<8x192xf32> to vector<8x64xf32>
    %172 = vector.extract_strided_slice %150 {offsets = [0, 128], sizes = [8, 64], strides = [1, 1]} : vector<8x192xf32> to vector<8x64xf32>
    %173 = arith.mulf %160, %172 : vector<8x64xf32>
    %174 = arith.addf %171, %173 : vector<8x64xf32>
    %175 = math.tanh %174 : vector<8x64xf32>
    %cst_52 = arith.constant 1.000000e+00 : f32
    %176 = vector.broadcast %cst_52 : f32 to vector<8x64xf32>
    %177 = arith.subf %176, %170 : vector<8x64xf32>
    %178 = arith.mulf %177, %175 : vector<8x64xf32>
    %179 = arith.mulf %170, %145 : vector<8x64xf32>
    %180 = arith.addf %178, %179 : vector<8x64xf32>
    %c24 = arith.constant 24 : index
    %c0_53 = arith.constant 0 : index
    %181 = vector.load %arg11[%c24, %c0_53] : memref<64x64xf32, #tpu.memory_space<vmem>>, vector<8x64xf32>
    tpu.vector_store %arg11[%c24, %c0_53], %180 {strides = array<i32>} : memref<64x64xf32, #tpu.memory_space<vmem>>, vector<8x64xf32>,
    %182 = vector.extract_strided_slice %34 {offsets = [32, 0], sizes = [8, 192], strides = [1, 1]} : vector<64x192xf32> to vector<8x192xf32>
    %cst_54 = arith.constant dense<0.000000e+00> : vector<8x192xf32>
    %183 = tpu.matmul %180, %35, %cst_54 {dimension_numbers = #tpu.dot_dimension_numbers<[1], [0], [0], [1], [0, 0, 1, 1], [], []>} : vector<8x64xf32>, vector<64x192xf32>, vector<8x192xf32> -> vector<8x192xf32>
    %184 = vector.broadcast %36 : vector<1x192xf32> to vector<8x192xf32>
    %185 = arith.addf %183, %184 : vector<8x192xf32>
    %186 = vector.extract_strided_slice %182 {offsets = [0, 0], sizes = [8, 64], strides = [1, 1]} : vector<8x192xf32> to vector<8x64xf32>
    %187 = vector.extract_strided_slice %185 {offsets = [0, 0], sizes = [8, 64], strides = [1, 1]} : vector<8x192xf32> to vector<8x64xf32>
    %188 = arith.addf %186, %187 : vector<8x64xf32>
    %cst_55 = arith.constant 5.000000e-01 : f32
    %189 = vector.broadcast %cst_55 : f32 to vector<8x64xf32>
    %190 = arith.mulf %189, %188 : vector<8x64xf32>
    %191 = math.tanh %190 : vector<8x64xf32>
    %cst_56 = arith.constant 1.000000e+00 : f32
    %192 = vector.broadcast %cst_56 : f32 to vector<8x64xf32>
    %193 = arith.addf %191, %192 : vector<8x64xf32>
    %cst_57 = arith.constant 5.000000e-01 : f32
    %194 = vector.broadcast %cst_57 : f32 to vector<8x64xf32>
    %195 = arith.mulf %194, %193 : vector<8x64xf32>
    %196 = vector.extract_strided_slice %182 {offsets = [0, 64], sizes = [8, 64], strides = [1, 1]} : vector<8x192xf32> to vector<8x64xf32>
    %197 = vector.extract_strided_slice %185 {offsets = [0, 64], sizes = [8, 64], strides = [1, 1]} : vector<8x192xf32> to vector<8x64xf32>
    %198 = arith.addf %196, %197 : vector<8x64xf32>
    %cst_58 = arith.constant 5.000000e-01 : f32
    %199 = vector.broadcast %cst_58 : f32 to vector<8x64xf32>
    %200 = arith.mulf %199, %198 : vector<8x64xf32>
    %201 = math.tanh %200 : vector<8x64xf32>
    %cst_59 = arith.constant 1.000000e+00 : f32
    %202 = vector.broadcast %cst_59 : f32 to vector<8x64xf32>
    %203 = arith.addf %201, %202 : vector<8x64xf32>
    %cst_60 = arith.constant 5.000000e-01 : f32
    %204 = vector.broadcast %cst_60 : f32 to vector<8x64xf32>
    %205 = arith.mulf %204, %203 : vector<8x64xf32>
    %206 = vector.extract_strided_slice %182 {offsets = [0, 128], sizes = [8, 64], strides = [1, 1]} : vector<8x192xf32> to vector<8x64xf32>
    %207 = vector.extract_strided_slice %185 {offsets = [0, 128], sizes = [8, 64], strides = [1, 1]} : vector<8x192xf32> to vector<8x64xf32>
    %208 = arith.mulf %195, %207 : vector<8x64xf32>
    %209 = arith.addf %206, %208 : vector<8x64xf32>
    %210 = math.tanh %209 : vector<8x64xf32>
    %cst_61 = arith.constant 1.000000e+00 : f32
    %211 = vector.broadcast %cst_61 : f32 to vector<8x64xf32>
    %212 = arith.subf %211, %205 : vector<8x64xf32>
    %213 = arith.mulf %212, %210 : vector<8x64xf32>
    %214 = arith.mulf %205, %180 : vector<8x64xf32>
    %215 = arith.addf %213, %214 : vector<8x64xf32>
    %c32 = arith.constant 32 : index
    %c0_62 = arith.constant 0 : index
    %216 = vector.load %arg11[%c32, %c0_62] : memref<64x64xf32, #tpu.memory_space<vmem>>, vector<8x64xf32>
    tpu.vector_store %arg11[%c32, %c0_62], %215 {strides = array<i32>} : memref<64x64xf32, #tpu.memory_space<vmem>>, vector<8x64xf32>,
    %217 = vector.extract_strided_slice %34 {offsets = [40, 0], sizes = [8, 192], strides = [1, 1]} : vector<64x192xf32> to vector<8x192xf32>
    %cst_63 = arith.constant dense<0.000000e+00> : vector<8x192xf32>
    %218 = tpu.matmul %215, %35, %cst_63 {dimension_numbers = #tpu.dot_dimension_numbers<[1], [0], [0], [1], [0, 0, 1, 1], [], []>} : vector<8x64xf32>, vector<64x192xf32>, vector<8x192xf32> -> vector<8x192xf32>
    %219 = vector.broadcast %36 : vector<1x192xf32> to vector<8x192xf32>
    %220 = arith.addf %218, %219 : vector<8x192xf32>
    %221 = vector.extract_strided_slice %217 {offsets = [0, 0], sizes = [8, 64], strides = [1, 1]} : vector<8x192xf32> to vector<8x64xf32>
    %222 = vector.extract_strided_slice %220 {offsets = [0, 0], sizes = [8, 64], strides = [1, 1]} : vector<8x192xf32> to vector<8x64xf32>
    %223 = arith.addf %221, %222 : vector<8x64xf32>
    %cst_64 = arith.constant 5.000000e-01 : f32
    %224 = vector.broadcast %cst_64 : f32 to vector<8x64xf32>
    %225 = arith.mulf %224, %223 : vector<8x64xf32>
    %226 = math.tanh %225 : vector<8x64xf32>
    %cst_65 = arith.constant 1.000000e+00 : f32
    %227 = vector.broadcast %cst_65 : f32 to vector<8x64xf32>
    %228 = arith.addf %226, %227 : vector<8x64xf32>
    %cst_66 = arith.constant 5.000000e-01 : f32
    %229 = vector.broadcast %cst_66 : f32 to vector<8x64xf32>
    %230 = arith.mulf %229, %228 : vector<8x64xf32>
    %231 = vector.extract_strided_slice %217 {offsets = [0, 64], sizes = [8, 64], strides = [1, 1]} : vector<8x192xf32> to vector<8x64xf32>
    %232 = vector.extract_strided_slice %220 {offsets = [0, 64], sizes = [8, 64], strides = [1, 1]} : vector<8x192xf32> to vector<8x64xf32>
    %233 = arith.addf %231, %232 : vector<8x64xf32>
    %cst_67 = arith.constant 5.000000e-01 : f32
    %234 = vector.broadcast %cst_67 : f32 to vector<8x64xf32>
    %235 = arith.mulf %234, %233 : vector<8x64xf32>
    %236 = math.tanh %235 : vector<8x64xf32>
    %cst_68 = arith.constant 1.000000e+00 : f32
    %237 = vector.broadcast %cst_68 : f32 to vector<8x64xf32>
    %238 = arith.addf %236, %237 : vector<8x64xf32>
    %cst_69 = arith.constant 5.000000e-01 : f32
    %239 = vector.broadcast %cst_69 : f32 to vector<8x64xf32>
    %240 = arith.mulf %239, %238 : vector<8x64xf32>
    %241 = vector.extract_strided_slice %217 {offsets = [0, 128], sizes = [8, 64], strides = [1, 1]} : vector<8x192xf32> to vector<8x64xf32>
    %242 = vector.extract_strided_slice %220 {offsets = [0, 128], sizes = [8, 64], strides = [1, 1]} : vector<8x192xf32> to vector<8x64xf32>
    %243 = arith.mulf %230, %242 : vector<8x64xf32>
    %244 = arith.addf %241, %243 : vector<8x64xf32>
    %245 = math.tanh %244 : vector<8x64xf32>
    %cst_70 = arith.constant 1.000000e+00 : f32
    %246 = vector.broadcast %cst_70 : f32 to vector<8x64xf32>
    %247 = arith.subf %246, %240 : vector<8x64xf32>
    %248 = arith.mulf %247, %245 : vector<8x64xf32>
    %249 = arith.mulf %240, %215 : vector<8x64xf32>
    %250 = arith.addf %248, %249 : vector<8x64xf32>
    %c40 = arith.constant 40 : index
    %c0_71 = arith.constant 0 : index
    %251 = vector.load %arg11[%c40, %c0_71] : memref<64x64xf32, #tpu.memory_space<vmem>>, vector<8x64xf32>
    tpu.vector_store %arg11[%c40, %c0_71], %250 {strides = array<i32>} : memref<64x64xf32, #tpu.memory_space<vmem>>, vector<8x64xf32>,
    %252 = vector.extract_strided_slice %34 {offsets = [48, 0], sizes = [8, 192], strides = [1, 1]} : vector<64x192xf32> to vector<8x192xf32>
    %cst_72 = arith.constant dense<0.000000e+00> : vector<8x192xf32>
    %253 = tpu.matmul %250, %35, %cst_72 {dimension_numbers = #tpu.dot_dimension_numbers<[1], [0], [0], [1], [0, 0, 1, 1], [], []>} : vector<8x64xf32>, vector<64x192xf32>, vector<8x192xf32> -> vector<8x192xf32>
    %254 = vector.broadcast %36 : vector<1x192xf32> to vector<8x192xf32>
    %255 = arith.addf %253, %254 : vector<8x192xf32>
    %256 = vector.extract_strided_slice %252 {offsets = [0, 0], sizes = [8, 64], strides = [1, 1]} : vector<8x192xf32> to vector<8x64xf32>
    %257 = vector.extract_strided_slice %255 {offsets = [0, 0], sizes = [8, 64], strides = [1, 1]} : vector<8x192xf32> to vector<8x64xf32>
    %258 = arith.addf %256, %257 : vector<8x64xf32>
    %cst_73 = arith.constant 5.000000e-01 : f32
    %259 = vector.broadcast %cst_73 : f32 to vector<8x64xf32>
    %260 = arith.mulf %259, %258 : vector<8x64xf32>
    %261 = math.tanh %260 : vector<8x64xf32>
    %cst_74 = arith.constant 1.000000e+00 : f32
    %262 = vector.broadcast %cst_74 : f32 to vector<8x64xf32>
    %263 = arith.addf %261, %262 : vector<8x64xf32>
    %cst_75 = arith.constant 5.000000e-01 : f32
    %264 = vector.broadcast %cst_75 : f32 to vector<8x64xf32>
    %265 = arith.mulf %264, %263 : vector<8x64xf32>
    %266 = vector.extract_strided_slice %252 {offsets = [0, 64], sizes = [8, 64], strides = [1, 1]} : vector<8x192xf32> to vector<8x64xf32>
    %267 = vector.extract_strided_slice %255 {offsets = [0, 64], sizes = [8, 64], strides = [1, 1]} : vector<8x192xf32> to vector<8x64xf32>
    %268 = arith.addf %266, %267 : vector<8x64xf32>
    %cst_76 = arith.constant 5.000000e-01 : f32
    %269 = vector.broadcast %cst_76 : f32 to vector<8x64xf32>
    %270 = arith.mulf %269, %268 : vector<8x64xf32>
    %271 = math.tanh %270 : vector<8x64xf32>
    %cst_77 = arith.constant 1.000000e+00 : f32
    %272 = vector.broadcast %cst_77 : f32 to vector<8x64xf32>
    %273 = arith.addf %271, %272 : vector<8x64xf32>
    %cst_78 = arith.constant 5.000000e-01 : f32
    %274 = vector.broadcast %cst_78 : f32 to vector<8x64xf32>
    %275 = arith.mulf %274, %273 : vector<8x64xf32>
    %276 = vector.extract_strided_slice %252 {offsets = [0, 128], sizes = [8, 64], strides = [1, 1]} : vector<8x192xf32> to vector<8x64xf32>
    %277 = vector.extract_strided_slice %255 {offsets = [0, 128], sizes = [8, 64], strides = [1, 1]} : vector<8x192xf32> to vector<8x64xf32>
    %278 = arith.mulf %265, %277 : vector<8x64xf32>
    %279 = arith.addf %276, %278 : vector<8x64xf32>
    %280 = math.tanh %279 : vector<8x64xf32>
    %cst_79 = arith.constant 1.000000e+00 : f32
    %281 = vector.broadcast %cst_79 : f32 to vector<8x64xf32>
    %282 = arith.subf %281, %275 : vector<8x64xf32>
    %283 = arith.mulf %282, %280 : vector<8x64xf32>
    %284 = arith.mulf %275, %250 : vector<8x64xf32>
    %285 = arith.addf %283, %284 : vector<8x64xf32>
    %c48 = arith.constant 48 : index
    %c0_80 = arith.constant 0 : index
    %286 = vector.load %arg11[%c48, %c0_80] : memref<64x64xf32, #tpu.memory_space<vmem>>, vector<8x64xf32>
    tpu.vector_store %arg11[%c48, %c0_80], %285 {strides = array<i32>} : memref<64x64xf32, #tpu.memory_space<vmem>>, vector<8x64xf32>,
    %287 = vector.extract_strided_slice %34 {offsets = [56, 0], sizes = [8, 192], strides = [1, 1]} : vector<64x192xf32> to vector<8x192xf32>
    %cst_81 = arith.constant dense<0.000000e+00> : vector<8x192xf32>
    %288 = tpu.matmul %285, %35, %cst_81 {dimension_numbers = #tpu.dot_dimension_numbers<[1], [0], [0], [1], [0, 0, 1, 1], [], []>} : vector<8x64xf32>, vector<64x192xf32>, vector<8x192xf32> -> vector<8x192xf32>
    %289 = vector.broadcast %36 : vector<1x192xf32> to vector<8x192xf32>
    %290 = arith.addf %288, %289 : vector<8x192xf32>
    %291 = vector.extract_strided_slice %287 {offsets = [0, 0], sizes = [8, 64], strides = [1, 1]} : vector<8x192xf32> to vector<8x64xf32>
    %292 = vector.extract_strided_slice %290 {offsets = [0, 0], sizes = [8, 64], strides = [1, 1]} : vector<8x192xf32> to vector<8x64xf32>
    %293 = arith.addf %291, %292 : vector<8x64xf32>
    %cst_82 = arith.constant 5.000000e-01 : f32
    %294 = vector.broadcast %cst_82 : f32 to vector<8x64xf32>
    %295 = arith.mulf %294, %293 : vector<8x64xf32>
    %296 = math.tanh %295 : vector<8x64xf32>
    %cst_83 = arith.constant 1.000000e+00 : f32
    %297 = vector.broadcast %cst_83 : f32 to vector<8x64xf32>
    %298 = arith.addf %296, %297 : vector<8x64xf32>
    %cst_84 = arith.constant 5.000000e-01 : f32
    %299 = vector.broadcast %cst_84 : f32 to vector<8x64xf32>
    %300 = arith.mulf %299, %298 : vector<8x64xf32>
    %301 = vector.extract_strided_slice %287 {offsets = [0, 64], sizes = [8, 64], strides = [1, 1]} : vector<8x192xf32> to vector<8x64xf32>
    %302 = vector.extract_strided_slice %290 {offsets = [0, 64], sizes = [8, 64], strides = [1, 1]} : vector<8x192xf32> to vector<8x64xf32>
    %303 = arith.addf %301, %302 : vector<8x64xf32>
    %cst_85 = arith.constant 5.000000e-01 : f32
    %304 = vector.broadcast %cst_85 : f32 to vector<8x64xf32>
    %305 = arith.mulf %304, %303 : vector<8x64xf32>
    %306 = math.tanh %305 : vector<8x64xf32>
    %cst_86 = arith.constant 1.000000e+00 : f32
    %307 = vector.broadcast %cst_86 : f32 to vector<8x64xf32>
    %308 = arith.addf %306, %307 : vector<8x64xf32>
    %cst_87 = arith.constant 5.000000e-01 : f32
    %309 = vector.broadcast %cst_87 : f32 to vector<8x64xf32>
    %310 = arith.mulf %309, %308 : vector<8x64xf32>
    %311 = vector.extract_strided_slice %287 {offsets = [0, 128], sizes = [8, 64], strides = [1, 1]} : vector<8x192xf32> to vector<8x64xf32>
    %312 = vector.extract_strided_slice %290 {offsets = [0, 128], sizes = [8, 64], strides = [1, 1]} : vector<8x192xf32> to vector<8x64xf32>
    %313 = arith.mulf %300, %312 : vector<8x64xf32>
    %314 = arith.addf %311, %313 : vector<8x64xf32>
    %315 = math.tanh %314 : vector<8x64xf32>
    %cst_88 = arith.constant 1.000000e+00 : f32
    %316 = vector.broadcast %cst_88 : f32 to vector<8x64xf32>
    %317 = arith.subf %316, %310 : vector<8x64xf32>
    %318 = arith.mulf %317, %315 : vector<8x64xf32>
    %319 = arith.mulf %310, %285 : vector<8x64xf32>
    %320 = arith.addf %318, %319 : vector<8x64xf32>
    %c56 = arith.constant 56 : index
    %c0_89 = arith.constant 0 : index
    %321 = vector.load %arg11[%c56, %c0_89] : memref<64x64xf32, #tpu.memory_space<vmem>>, vector<8x64xf32>
    tpu.vector_store %arg11[%c56, %c0_89], %320 {strides = array<i32>} : memref<64x64xf32, #tpu.memory_space<vmem>>, vector<8x64xf32>,
    %322 = vector.extract_strided_slice %320 {offsets = [0, 0], sizes = [8, 32], strides = [1, 1]} : vector<8x64xf32> to vector<8x32xf32>
    %c0_90 = arith.constant 0 : index
    %c0_91 = arith.constant 0 : index
    %c0_92 = arith.constant 0 : index
    %323 = vector.load %arg10[%c0_90, %c0_91, %c0_92] : memref<2x8x32xf32, #tpu.memory_space<vmem>>, vector<1x8x32xf32>
    %324 = vector.shape_cast %323 : vector<1x8x32xf32> to vector<8x32xf32>
    %325 = vector.shape_cast %322 : vector<8x32xf32> to vector<1x8x32xf32>
    tpu.vector_store %arg10[%c0_90, %c0_91, %c0_92], %325 {strides = array<i32>} : memref<2x8x32xf32, #tpu.memory_space<vmem>>, vector<1x8x32xf32>,
    %326 = vector.extract_strided_slice %320 {offsets = [0, 32], sizes = [8, 32], strides = [1, 1]} : vector<8x64xf32> to vector<8x32xf32>
    %c1_93 = arith.constant 1 : index
    %c0_94 = arith.constant 0 : index
    %c0_95 = arith.constant 0 : index
    %327 = vector.load %arg10[%c1_93, %c0_94, %c0_95] : memref<2x8x32xf32, #tpu.memory_space<vmem>>, vector<1x8x32xf32>
    %328 = vector.shape_cast %327 : vector<1x8x32xf32> to vector<8x32xf32>
    %329 = vector.shape_cast %326 : vector<8x32xf32> to vector<1x8x32xf32>
    tpu.vector_store %arg10[%c1_93, %c0_94, %c0_95], %329 {strides = array<i32>} : memref<2x8x32xf32, #tpu.memory_space<vmem>>, vector<1x8x32xf32>,
    %c0_96 = arith.constant 0 : index
    %c0_97 = arith.constant 0 : index
    %330 = vector.load %arg11[%c0_96, %c0_97] : memref<64x64xf32, #tpu.memory_space<vmem>>, vector<64x64xf32>
    %331 = tpu.iota {dimensions = array<i32: 1>} : vector<64x64xi32>
    %c32_i32_98 = arith.constant 32 : i32
    %332 = vector.broadcast %c32_i32_98 : i32 to vector<64x64xi32>
    %333 = arith.cmpi slt, %331, %332 : vector<64x64xi32>
    %334 = vector.extract_strided_slice %330 {offsets = [56, 0], sizes = [8, 64], strides = [1, 1]} : vector<64x64xf32> to vector<8x64xf32>
    %335 = vector.extract_strided_slice %330 {offsets = [48, 0], sizes = [8, 64], strides = [1, 1]} : vector<64x64xf32> to vector<8x64xf32>
    %336 = vector.extract_strided_slice %330 {offsets = [40, 0], sizes = [8, 64], strides = [1, 1]} : vector<64x64xf32> to vector<8x64xf32>
    %337 = vector.extract_strided_slice %330 {offsets = [32, 0], sizes = [8, 64], strides = [1, 1]} : vector<64x64xf32> to vector<8x64xf32>
    %338 = vector.extract_strided_slice %330 {offsets = [24, 0], sizes = [8, 64], strides = [1, 1]} : vector<64x64xf32> to vector<8x64xf32>
    %339 = vector.extract_strided_slice %330 {offsets = [16, 0], sizes = [8, 64], strides = [1, 1]} : vector<64x64xf32> to vector<8x64xf32>
    %340 = vector.extract_strided_slice %330 {offsets = [8, 0], sizes = [8, 64], strides = [1, 1]} : vector<64x64xf32> to vector<8x64xf32>
    %341 = vector.extract_strided_slice %330 {offsets = [0, 0], sizes = [8, 64], strides = [1, 1]} : vector<64x64xf32> to vector<8x64xf32>
    %342 = tpu.concatenate %334, %335, %336, %337, %338, %339, %340, %341 in 0 : vector<8x64xf32>, vector<8x64xf32>, vector<8x64xf32>, vector<8x64xf32>, vector<8x64xf32>, vector<8x64xf32>, vector<8x64xf32>, vector<8x64xf32> -> vector<64x64xf32>
    %343 = arith.select %333, %330, %342 : vector<64x64xi1>, vector<64x64xf32>
    %c0_99 = arith.constant 0 : index
    %c0_100 = arith.constant 0 : index
    %344 = vector.load %arg8[%c0_99, %c0_100] : memref<64x64xf32, #tpu.memory_space<vmem>>, vector<64x64xf32>
    tpu.vector_store %arg8[%c0_99, %c0_100], %343 {strides = array<i32>} : memref<64x64xf32, #tpu.memory_space<vmem>>, vector<64x64xf32>,
    %c0_101 = arith.constant 0 : index
    %c0_102 = arith.constant 0 : index
    %345 = vector.load %arg6[%c0_101, %c0_102] : memref<1x64xf32, #tpu.memory_space<vmem>>, vector<1x64xf32>
    %346 = vector.broadcast %345 : vector<1x64xf32> to vector<64x64xf32>
    %347 = arith.mulf %343, %346 : vector<64x64xf32>
    %cst_103 = arith.constant dense<0.000000e+00> : vector<64xf32>
    %348 = vector.multi_reduction <add>, %347, %cst_103 [1] : vector<64x64xf32> to vector<64xf32>
    %349 = vector.shape_cast %348 : vector<64xf32> to vector<64x1xf32>
    %c0_104 = arith.constant 0 : index
    %c0_105 = arith.constant 0 : index
    %350 = vector.load %arg7[%c0_104, %c0_105] : memref<1x1xf32, #tpu.memory_space<vmem>>, vector<1x1xf32>
    %351 = vector.broadcast %350 : vector<1x1xf32> to vector<64x1xf32>
    %352 = arith.addf %349, %351 : vector<64x1xf32>
    %cst_106 = arith.constant 5.000000e-01 : f32
    %353 = vector.broadcast %cst_106 : f32 to vector<64x1xf32>
    %354 = arith.mulf %353, %352 : vector<64x1xf32>
    %355 = math.tanh %354 : vector<64x1xf32>
    %cst_107 = arith.constant 1.000000e+00 : f32
    %356 = vector.broadcast %cst_107 : f32 to vector<64x1xf32>
    %357 = arith.addf %355, %356 : vector<64x1xf32>
    %cst_108 = arith.constant 5.000000e-01 : f32
    %358 = vector.broadcast %cst_108 : f32 to vector<64x1xf32>
    %359 = arith.mulf %358, %357 : vector<64x1xf32>
    %c0_109 = arith.constant 0 : index
    %c0_110 = arith.constant 0 : index
    %360 = vector.load %arg9[%c0_109, %c0_110] : memref<64x1xf32, #tpu.memory_space<vmem>>, vector<64x1xf32>
    tpu.vector_store %arg9[%c0_109, %c0_110], %359 {strides = array<i32>} : memref<64x1xf32, #tpu.memory_space<vmem>>, vector<64x1xf32>,
    return
  }
}

</mosaic_0001>

<bundles_post_ra>
// kernel: answer_encoder_rnn_forward.1
= control target key start
LH: loop header
LB: loop body
LE: loop exit
PB: predicated region body
PF: predicated region fallthrough
CT: control target
= control target key end

     0   :  { %s1798_s0 = inlined_call_operand.vmem [shape: f32[64,16], index: 0, kind: input, shape index: {}]   ;;  %s1799_s1 = inlined_call_operand.hbm [shape: f32[2,8,32], index: 1, kind: input, shape index: {}]   ;;  %s1800_s2 = inlined_call_operand.hbm [shape: f32[16,192], index: 2, kind: input, shape index: {}]   ;;  %s1801_s3 = inlined_call_operand.vmem [shape: f32[1,192], index: 3, kind: input, shape index: {}]   ;;  %s1802_s4 = inlined_call_operand.vmem [shape: f32[64,192], index: 4, kind: input, shape index: {}]   ;;  %s1803_s5 = inlined_call_operand.vmem [shape: f32[1,192], index: 5, kind: input, shape index: {}]   ;;  %s1804_s6 = inlined_call_operand.vmem [shape: f32[1,64], index: 6, kind: input, shape index: {}]   ;;  %s1805_s7 = inlined_call_operand.<no memory space> [shape: f32[1,1], index: 7, kind: input, shape index: {}]   ;;  %s1806_s8 = inlined_call_operand.vmem [shape: f32[64,64], index: 8, kind: output, shape index: {0}]   ;;  %s1807_s9 = inlined_call_operand.vmem [shape: f32[64,1], index: 9, kind: output, shape index: {1}]   ;;  %s1808_s10 = inlined_call_operand.hbm [shape: f32[2,8,32], index: 10, kind: output, shape index: {2}]  }
   0x1   :  { %v16_v0 = vstv %s1805_s7 }
   0x2   :  { %17 = vst [vmem:[#allocation3] sm:$0x1] %v16_v0 }
   0x3   :  { %18 = vsyncpa [#allocation5], 0 }
   0x4   :  { %19 = vsyncpa [#allocation8], 0 }
   0x5   :  { %20 = vsyncpa [#allocation6], 0  ;;  %s27_s17 = sshll.u32 %s1799_s1, 4  ;;  %s1094_s18 = smov [#allocation4]   ;;  %s28_s17 = int_to_ptr.hbm [resolvable:$true] %s27_s17 }
   0x6   :  { %s29_s19 = sshll.u32 %s1094_s18, 4  ;;  %s40_s22 = sshll.u32 %s1800_s2, 4  ;;  %s30_s19 = int_to_ptr.vmem [resolvable:$true] %s29_s19  ;;  %s41_s22 = int_to_ptr.hbm [resolvable:$true] %s40_s22 }
   0x7   :  { %s1095_s23 = smov 128   ;;  %s1096_s24 = smov 8  }
   0x8   :  { %35 = dma.hbm_to_vmem [thread:$0]  %s28_s17, 256, %s30_s19, [#allocation5], %s1095_s23, %s1095_s23, %s1096_s24  }
   0x9   :  { %s1097_s7 = smov [#allocation7]   ;;  %s1098_s26 = smov 256  }
   0xa   :  { %s42_s25 = sshll.u32 %s1097_s7, 4  ;;  %s1099_s1 = smov 16   ;;  %s43_s25 = int_to_ptr.vmem [resolvable:$true] %s42_s25 }
   0xb   :  { %48 = dma.hbm_to_vmem [thread:$0]  %s41_s22, 512, %s43_s25, [#allocation8], %s1098_s26, %s1098_s26, %s1099_s1  }
   0xc   :  { %1088 = dma.done.wait [#allocation5], 256  }
   0xd   :  { %1089 = vsyncadd [#allocation5], 4294967040 }
   0xe   :  { %1090 = dma.done.wait [#allocation8], 512  }
   0xf   :  { %1091 = vsyncadd [#allocation8], 4294966784  ;;  %v256_v1 = vld [vmem:[#allocation4 + $0x8] sm:$0xff]  ;;  %v77_v2 = vld [vmem:[#allocation7 + $0x10] sm:$0xff]  ;;  %s1100_s2 = smov 32   ;;  %vm85_vm0 = vcmask 130048   ;;  %v192_v46 = vlaneseq }
  0x10   :  { %v75_v3 = vld [vmem:[#allocation7] sm:$0xff]  ;;  %258 = vrot.lane.b32.xlu0 %v256_v1, %s1100_s2  ;;  %124 = vmatpush.msra.mxu0 %v77_v2  ;;  %v67_v4 = vld [vmem:[%s1798_s0] sm:$0xff]  ;;  %v78_v5 = vld [vmem:[#allocation7 + $0x18] sm:$0xff]  ;;  %vm261_vm1 = vcmask 261120   ;;  %vm268_vm2 = vcmask 523264   ;;  %vm888_vm6 = vcmask 7168  }
  0x11   :  { %165 = vmatpush.msra.mxu1 %v78_v5  ;;  %v76_v6 = vld [vmem:[#allocation7 + $0x8] sm:$0xff]  ;;  %v68_v7 = vld [vmem:[%s1798_s0 + $0x8] sm:$0xff]  ;;  %v69_v8 = vld [vmem:[%s1798_s0 + $0x10] sm:$0xff]  ;;  %v1388_v50 = vand.u32 127, %v192_v46  ;;  %s907_s18 = sshll.u32 %s1808_s10, 4  ;;  %s908_s18 = int_to_ptr.hbm [resolvable:$true] %s907_s18 }
  0x12   :  { %125 = vmatpush.msra.mxu0 %v75_v3  ;;  %v70_v9 = vld [vmem:[%s1798_s0 + $0x18] sm:$0xff]  ;;  %v1194_v10 = vld [vmem:[%s1802_s4 + $0x70] sm:$0xff]  ;;  %v1204_v12 = vld [vmem:[%s1802_s4 + $0x60] sm:$0xff] }
  0x13   :  { %925 = vmatmul.msk.f32.vlgmr.msra.gmra.mxu0 %vm85_vm0, %v67_v4  ;;  %166 = vmatpush.msra.mxu1 %v76_v6  ;;  %v1199_v11 = vld [vmem:[%s1802_s4 + $0x78] sm:$0xff]  ;;  %v1211_v13 = vld [vmem:[%s1802_s4 + $0x68] sm:$0xff]  ;;  %v1216_v14 = vld [vmem:[%s1802_s4 + $0x50] sm:$0xff]  ;;  %v194_v52 = vadd.s32 128, %v1388_v50  ;;  %v199_v3 = vand.u32 63, %v1388_v50  ;;  %vm791_vm5 = vcmp.lt.s32.totalorder %v1388_v50, 32 }
  0x14   :  { %933 = vmatmul.msk.f32.vlgmr.msra.gmra.mxu1 %vm85_vm0, %v67_v4  ;;  %280 = vmatpush.msra.mxu2 %v1194_v10  ;;  %v1221_v15 = vld [vmem:[%s1802_s4 + $0x58] sm:$0xff]  ;;  %v71_v16 = vld [vmem:[%s1798_s0 + $0x20] sm:$0xff]  ;;  %v1242_v18 = vld [vmem:[%s1802_s4 + $0x48] sm:$0xff] }
  0x15   :  { %300 = vmatpush.msra.mxu3 %v1199_v11  ;;  %535 = vmatpush.msrb.mxu0 %v1194_v10  ;;  %v1233_v17 = vld [vmem:[%s1802_s4 + $0x40] sm:$0xff]  ;;  %v1247_v19 = vld [vmem:[%s1802_s4 + $0x30] sm:$0xff]  ;;  %v1256_v20 = vld [vmem:[%s1802_s4 + $0x38] sm:$0xff]  ;;  %v206_v53 = vand.u32 63, %v194_v52  ;;  %vm1424_vm4 = vcmp.lt.s32.totalorder %v199_v3, 32 }
  0x16   :  { %555 = vmatpush.msrb.mxu1 %v1199_v11  ;;  %281 = vmatpush.msra.mxu2 %v1204_v12  ;;  %v1263_v21 = vld [vmem:[%s1802_s4 + $0x20] sm:$0xff]  ;;  %v1269_v22 = vld [vmem:[%s1802_s4 + $0x28] sm:$0xff]  ;;  %v1276_v23 = vld [vmem:[%s1802_s4 + $0x10] sm:$0xff] }
  0x17   :  { %301 = vmatpush.msra.mxu3 %v1211_v13  ;;  %536 = vmatpush.msrb.mxu0 %v1204_v12  ;;  %v1283_v24 = vld [vmem:[%s1802_s4 + $0x18] sm:$0xff]  ;;  %v72_v25 = vld [vmem:[%s1798_s0 + $0x28] sm:$0xff]  ;;  %v73_v26 = vld [vmem:[%s1798_s0 + $0x30] sm:$0xff]  ;;  %vm1397_vm3 = vcmp.lt.s32.totalorder %v206_v53, 32 }
  0x18   :  { %556 = vmatpush.msrb.mxu1 %v1211_v13  ;;  %282 = vmatpush.msra.mxu2 %v1216_v14  ;;  %v74_v27 = vld [vmem:[%s1798_s0 + $0x38] sm:$0xff]  ;;  %v1312_v28 = vld [vmem:[%s1802_s4] sm:$0xff]  ;;  %v1317_v29 = vld [vmem:[%s1802_s4 + $0x8] sm:$0xff]  ;;  %s1101_s0 = smov 64  }
  0x19   :  { %302 = vmatpush.msra.mxu3 %v1221_v15  ;;  %537 = vmatpush.msrb.mxu0 %v1216_v14  ;;  %v254_v30 = vld [vmem:[#allocation4] sm:$0xff] }
  0x1a   :  { %557 = vmatpush.msrb.mxu1 %v1221_v15  ;;  %283 = vmatpush.msra.mxu2 %v1233_v17  ;;  %v79_v35 = vld [vmem:[%s1801_s3] sm:$0x3]  ;;  %s1102_s3 = smov [#allocation9]  }
  0x1b   :  { %926 = vmatmul.msk.f32.gmra.mxu0 %vm85_vm0, %v68_v7  ;;  %303 = vmatpush.msra.mxu3 %v1242_v18  ;;  %v81_v36 = vperm.slane %v79_v35, 0  ;;  %v82_v38 = vperm.slane %v79_v35, 1  ;;  %s905_s16 = sshll.u32 %s1102_s3, 4  ;;  %s906_s16 = int_to_ptr.vmem [resolvable:$true] %s905_s16 }
  0x1c   :  { %934 = vmatmul.msk.f32.gmra.mxu1 %vm85_vm0, %v68_v7  ;;  %284 = vmatpush.msra.mxu2 %v1247_v19 }
  0x1d   :  { %538 = vmatpush.msrb.mxu0 %v1233_v17  ;;  %304 = vmatpush.msra.mxu3 %v1256_v20 }
  0x1e   :  { %558 = vmatpush.msrb.mxu1 %v1242_v18  ;;  %285 = vmatpush.msra.mxu2 %v1263_v21 }
  0x1f   :  { %539 = vmatpush.msrb.mxu0 %v1247_v19  ;;  %305 = vmatpush.msra.mxu3 %v1269_v22 }
  0x20   :  { %559 = vmatpush.msrb.mxu1 %v1256_v20  ;;  %286 = vmatpush.msra.mxu2 %v1276_v23 }
  0x21   :  { %540 = vmatpush.msrb.mxu0 %v1263_v21  ;;  %306 = vmatpush.msra.mxu3 %v1283_v24 }
  0x22   :  { %560 = vmatpush.msrb.mxu1 %v1269_v22  ;;  %287 = vmatpush.msra.mxu2 %v1312_v28 }
  0x23   :  { %927 = vmatmul.msk.f32.gmra.mxu0 %vm85_vm0, %v69_v8  ;;  %307 = vmatpush.msra.mxu3 %v1317_v29 }
  0x24   :  { %935 = vmatmul.msk.f32.gmra.mxu1 %vm85_vm0, %v69_v8  ;;  %541 = vmatpush.msrb.mxu0 %v1276_v23 }
  0x25   :  { %561 = vmatpush.msrb.mxu1 %v1283_v24  ;;  %346 = vmatpush.msrb.mxu2 %v1194_v10 }
  0x26   :  { %366 = vmatpush.msrb.mxu3 %v1199_v11  ;;  %542 = vmatpush.msrb.mxu0 %v1312_v28 }
  0x27   :  { %562 = vmatpush.msrb.mxu1 %v1317_v29  ;;  %347 = vmatpush.msrb.mxu2 %v1204_v12 }
  0x28   :  { %367 = vmatpush.msrb.mxu3 %v1211_v13  ;;  %661 = vmatpush.msra.mxu0 %v1194_v10 }
  0x29   :  { %681 = vmatpush.msra.mxu1 %v1199_v11  ;;  %348 = vmatpush.msrb.mxu2 %v1216_v14 }
  0x2a   :  { %368 = vmatpush.msrb.mxu3 %v1221_v15  ;;  %662 = vmatpush.msra.mxu0 %v1204_v12 }
  0x2b   :  { %928 = vmatmul.msk.f32.gmra.mxu0 %vm85_vm0, %v70_v9  ;;  %682 = vmatpush.msra.mxu1 %v1211_v13 }
  0x2c   :  { %936 = vmatmul.msk.f32.gmra.mxu1 %vm85_vm0, %v70_v9  ;;  %349 = vmatpush.msrb.mxu2 %v1233_v17 }
  0x2d   :  { %369 = vmatpush.msrb.mxu3 %v1242_v18  ;;  %663 = vmatpush.msra.mxu0 %v1216_v14 }
  0x2e   :  { %683 = vmatpush.msra.mxu1 %v1221_v15  ;;  %350 = vmatpush.msrb.mxu2 %v1247_v19 }
  0x2f   :  { %370 = vmatpush.msrb.mxu3 %v1256_v20  ;;  %664 = vmatpush.msra.mxu0 %v1233_v17 }
  0x30   :  { %684 = vmatpush.msra.mxu1 %v1242_v18  ;;  %351 = vmatpush.msrb.mxu2 %v1263_v21 }
  0x31   :  { %371 = vmatpush.msrb.mxu3 %v1269_v22  ;;  %665 = vmatpush.msra.mxu0 %v1247_v19 }
  0x32   :  { %685 = vmatpush.msra.mxu1 %v1256_v20  ;;  %352 = vmatpush.msrb.mxu2 %v1276_v23 }
  0x33   :  { %929 = vmatmul.msk.f32.gmra.mxu0 %vm85_vm0, %v71_v16  ;;  %372 = vmatpush.msrb.mxu3 %v1283_v24 }
  0x34   :  { %937 = vmatmul.msk.f32.gmra.mxu1 %vm85_vm0, %v71_v16  ;;  %666 = vmatpush.msra.mxu0 %v1263_v21 }
  0x35   :  { %686 = vmatpush.msra.mxu1 %v1269_v22  ;;  %353 = vmatpush.msrb.mxu2 %v1312_v28 }
  0x36   :  { %373 = vmatpush.msrb.mxu3 %v1317_v29  ;;  %667 = vmatpush.msra.mxu0 %v1276_v23 }
  0x37   :  { %687 = vmatpush.msra.mxu1 %v1283_v24 }
  0x38   :  { %668 = vmatpush.msra.mxu0 %v1312_v28 }
  0x39   :  { %688 = vmatpush.msra.mxu1 %v1317_v29 }
  0x3b   :  { %930 = vmatmul.msk.f32.gmra.mxu0 %vm85_vm0, %v72_v25 }
  0x3c   :  { %938 = vmatmul.msk.f32.gmra.mxu1 %vm85_vm0, %v72_v25 }
  0x43   :  { %931 = vmatmul.msk.f32.gmra.mxu0 %vm85_vm0, %v73_v26 }
  0x44   :  { %939 = vmatmul.msk.f32.gmra.mxu1 %vm85_vm0, %v73_v26 }
  0x4b   :  { %932 = vmatmul.msk.f32.gmra.mxu0 %vm85_vm0, %v74_v27 }
  0x4c   :  { %940 = vmatmul.msk.f32.gmra.mxu1 %vm85_vm0, %v74_v27 }
  0x82   :  { %v259_v31 = vpop.permute.xlu0 %258 }
  0x83   :  { %v262_v32 = vsel %vm261_vm1, %v254_v30, %v259_v31 }
  0x84   :  { %326 = vrot.lane.b32.xlu1 %v262_v32, %s1101_s0  ;;  %941 = vmatmul.msk.f32.vlgmr.msra.gmra.mxu2 %vm268_vm2, %v262_v32 }
  0x85   :  { %942 = vmatmul.msk.f32.vlgmr.msra.gmra.mxu3 %vm268_vm2, %v262_v32  ;;  %409 = vmatpush.msra.mxu2 %v1194_v10 }
  0x86   :  { %429 = vmatpush.msra.mxu3 %v1199_v11 }
  0x87   :  { %410 = vmatpush.msra.mxu2 %v1204_v12 }
  0x88   :  { %430 = vmatpush.msra.mxu3 %v1211_v13 }
  0x89   :  { %411 = vmatpush.msra.mxu2 %v1216_v14 }
  0x8a   :  { %431 = vmatpush.msra.mxu3 %v1221_v15 }
  0x8b   :  { %412 = vmatpush.msra.mxu2 %v1233_v17 }
  0x8c   :  { %432 = vmatpush.msra.mxu3 %v1242_v18 }
  0x8d   :  { %413 = vmatpush.msra.mxu2 %v1247_v19 }
  0x8e   :  { %433 = vmatpush.msra.mxu3 %v1256_v20 }
  0x8f   :  { %414 = vmatpush.msra.mxu2 %v1263_v21 }
  0x90   :  { %v127_v33 = vpop.f32.mrf.mxu0  ;;  %434 = vmatpush.msra.mxu3 %v1269_v22 }
  0x91   :  { %v168_v34 = vpop.f32.mrf.mxu1  ;;  %415 = vmatpush.msra.mxu2 %v1276_v23  ;;  %v1454_v31 = vadd.f32 %v127_v33, %v81_v36 }
  0x92   :  { %435 = vmatpush.msra.mxu3 %v1283_v24  ;;  %v1456_v32 = vadd.f32 %v168_v34, %v82_v38 }
  0x93   :  { %416 = vmatpush.msra.mxu2 %v1312_v28 }
  0x94   :  { %436 = vmatpush.msra.mxu3 %v1317_v29 }
  0x98   :  { %v130_v37 = vpop.f32.mrf.mxu0 }
  0x99   :  { %v1378_v39 = vadd.f32 %v130_v37, %v81_v36  ;;  %v171_v40 = vpop.f32.mrf.mxu1 }
  0x9a   :  { %v1380_v41 = vadd.f32 %v171_v40, %v82_v38 }
  0xa0   :  { %v133_v42 = vpop.f32.mrf.mxu0 }
  0xa1   :  { %v1382_v43 = vadd.f32 %v133_v42, %v81_v36  ;;  %v174_v44 = vpop.f32.mrf.mxu1 }
  0xa2   :  { %v1384_v45 = vadd.f32 %v174_v44, %v82_v38 }
  0xa8   :  { %v136_v47 = vpop.f32.mrf.mxu0 }
  0xa9   :  { %v1386_v48 = vadd.f32 %v136_v47, %v81_v36  ;;  %v177_v49 = vpop.f32.mrf.mxu1 }
  0xaa   :  { %v1390_v51 = vadd.f32 %v177_v49, %v82_v38 }
  0xb0   :  { %v139_v54 = vpop.f32.mrf.mxu0 }
  0xb1   :  { %v1393_v55 = vadd.f32 %v139_v54, %v81_v36  ;;  %v180_v56 = vpop.f32.mrf.mxu1 }
  0xb2   :  { %v1395_v57 = vadd.f32 %v180_v56, %v82_v38 }
  0xb3   :  { %v227_v44 = vsel %vm1424_vm4, %v1386_v48, %v1393_v55  ;;  %v229_v46 = vsel %vm1424_vm4, %v1393_v55, %v1386_v48 }
  0xb4   :  { %v228_v59 = vsel %vm1397_vm3, %v1390_v51, %v1395_v57  ;;  %v230_v60 = vsel %vm1397_vm3, %v1395_v57, %v1390_v51 }
  0xb8   :  { %v142_v61 = vpop.f32.mrf.mxu0 }
  0xb9   :  { %v1409_v62 = vadd.f32 %v142_v61, %v81_v36  ;;  %v183_v63 = vpop.f32.mrf.mxu1 }
  0xba   :  { %v1411_v0 = vadd.f32 %v183_v63, %v82_v38 }
  0xbb   :  { %v225_v9 = vsel %vm1424_vm4, %v1382_v43, %v1409_v62  ;;  %v231_v16 = vsel %vm1424_vm4, %v1409_v62, %v1382_v43 }
  0xbc   :  { %v226_v1 = vsel %vm1397_vm3, %v1384_v45, %v1411_v0  ;;  %v232_v2 = vsel %vm1397_vm3, %v1411_v0, %v1384_v45 }
  0xc0   :  { %v145_v4 = vpop.f32.mrf.mxu0 }
  0xc1   :  { %v1422_v5 = vadd.f32 %v145_v4, %v81_v36  ;;  %v186_v6 = vpop.f32.mrf.mxu1 }
  0xc2   :  { %v1428_v8 = vadd.f32 %v186_v6, %v82_v38 }
  0xc3   :  { %v223_v25 = vsel %vm1424_vm4, %v1378_v39, %v1422_v5  ;;  %v233_v26 = vsel %vm1424_vm4, %v1422_v5, %v1378_v39 }
  0xc4   :  { %v224_v27 = vsel %vm1397_vm3, %v1380_v41, %v1428_v8  ;;  %v234_v30 = vsel %vm1397_vm3, %v1428_v8, %v1380_v41 }
  0xc8   :  { %v148_v35 = vpop.f32.mrf.mxu0 }
  0xc9   :  { %v1458_v37 = vadd.f32 %v148_v35, %v81_v36  ;;  %v189_v40 = vpop.f32.mrf.mxu1  ;;  %v253_v36 = vld [vmem:[%s1803_s5] sm:$0x3] }
  0xca   :  { %v1460_v42 = vadd.f32 %v189_v40, %v82_v38  ;;  %v1481_v38 = vperm.slane %v253_v36, 0  ;;  %v1488_v56 = vperm.slane %v253_v36, 1 }
  0xcb   :  { %v235_v33 = vsel %vm1424_vm4, %v1458_v37, %v1454_v31  ;;  %v221_v52 = vsel %vm1424_vm4, %v1454_v31, %v1458_v37 }
  0xcc   :  { %v222_v40 = vsel %vm1397_vm3, %v1456_v32, %v1460_v42 }
  0xf6   :  { %v327_v36 = vpop.permute.xlu1 %326 }
 0x107   :  { %v289_v47 = vpop.f32.mrf.mxu2 }
 0x108   :  { %v290_v49 = vadd.f32 %v289_v47, %v1481_v38  ;;  %v309_v63 = vpop.f32.mrf.mxu3 }
 0x109   :  { %v310_v6 = vadd.f32 %v309_v63, %v1488_v56 }
 0x10a   :  { %v312_v53 = vadd.f32 %v290_v49, %v221_v52 }
 0x10c   :  { %v313_v54 = vmul.f32 0.5, %v312_v53 }
 0x10e   :  { %968 = vtanh.f32 %v313_v54 }
 0x114   :  { %v969_v61 = vpop.eup %968 }
 0x115   :  { %v315_v3 = vadd.f32 1.0, %v969_v61 }
 0x117   :  { %v316_v4 = vmul.f32 0.5, %v315_v3 }
 0x119   :  { %v317_v35 = vmul.f32 %v316_v4, %v310_v6  ;;  %v320_v49 = vsub.f32 1.0, %v316_v4  ;;  %v329_v53 = vmul.f32 %v327_v36, %v316_v4 }
 0x11b   :  { %v318_v47 = vadd.f32 %v317_v35, %v222_v40 }
 0x11d   :  { %970 = vtanh.f32 %v318_v47 }
 0x123   :  { %v971_v34 = vpop.eup %970 }
 0x124   :  { %322 = vrot.lane.b32.xlu0 %v971_v34, %s1101_s0 }
 0x196   :  { %v323_v52 = vpop.permute.xlu0 %322 }
 0x197   :  { %v325_v54 = vmul.f32 %v323_v52, %v320_v49 }
 0x199   :  { %v330_v61 = vadd.f32 %v329_v53, %v325_v54 }
 0x19b   :  { %332 = vrot.lane.b32.xlu1 %v330_v61, %s1101_s0 }
 0x20d   :  { %v333_v63 = vpop.permute.xlu1 %332 }
 0x20e   :  { %335 = vst.msk [vmem:[#allocation2] sm:$0xff] %vm268_vm2, %v333_v63  ;;  %943 = vmatmul.msk.f32.vlgmr.msrb.gmra.mxu2 %vm268_vm2, %v333_v63  ;;  %944 = vmatmul.msk.f32.vlgmr.msrb.gmra.mxu3 %vm268_vm2, %v333_v63 }
 0x20f   :  { %472 = vmatpush.msrb.mxu2 %v1194_v10  ;;  %492 = vmatpush.msrb.mxu3 %v1199_v11 }
 0x211   :  { %473 = vmatpush.msrb.mxu2 %v1204_v12  ;;  %493 = vmatpush.msrb.mxu3 %v1211_v13 }
 0x213   :  { %474 = vmatpush.msrb.mxu2 %v1216_v14  ;;  %494 = vmatpush.msrb.mxu3 %v1221_v15 }
 0x215   :  { %475 = vmatpush.msrb.mxu2 %v1233_v17  ;;  %495 = vmatpush.msrb.mxu3 %v1242_v18 }
 0x217   :  { %476 = vmatpush.msrb.mxu2 %v1247_v19  ;;  %496 = vmatpush.msrb.mxu3 %v1256_v20 }
 0x219   :  { %477 = vmatpush.msrb.mxu2 %v1263_v21  ;;  %497 = vmatpush.msrb.mxu3 %v1269_v22 }
 0x21b   :  { %478 = vmatpush.msrb.mxu2 %v1276_v23  ;;  %498 = vmatpush.msrb.mxu3 %v1283_v24 }
 0x21d   :  { %479 = vmatpush.msrb.mxu2 %v1312_v28  ;;  %499 = vmatpush.msrb.mxu3 %v1317_v29 }
 0x291   :  { %v355_v34 = vpop.f32.mrf.mxu2  ;;  %v375_v40 = vpop.f32.mrf.mxu3 }
 0x292   :  { %v356_v3 = vadd.f32 %v355_v34, %v1481_v38  ;;  %v376_v36 = vadd.f32 %v375_v40, %v1488_v56 }
 0x294   :  { %v378_v4 = vadd.f32 %v356_v3, %v223_v25 }
 0x296   :  { %v379_v6 = vmul.f32 0.5, %v378_v4 }
 0x298   :  { %972 = vtanh.f32 %v379_v6 }
 0x29e   :  { %v973_v35 = vpop.eup %972 }
 0x29f   :  { %v381_v47 = vadd.f32 1.0, %v973_v35 }
 0x2a1   :  { %v382_v49 = vmul.f32 0.5, %v381_v47 }
 0x2a3   :  { %v383_v52 = vmul.f32 %v382_v49, %v376_v36  ;;  %v386_v25 = vsub.f32 1.0, %v382_v49  ;;  %v392_v34 = vmul.f32 %v382_v49, %v330_v61 }
 0x2a5   :  { %v384_v53 = vadd.f32 %v383_v52, %v224_v27 }
 0x2a7   :  { %974 = vtanh.f32 %v384_v53 }
 0x2ad   :  { %v975_v54 = vpop.eup %974 }
 0x2ae   :  { %388 = vrot.lane.b32.xlu2 %v975_v54, %s1101_s0 }
 0x308   :  { %v389_v63 = vpop.permute.xlu2 %388 }
 0x309   :  { %v391_v3 = vmul.f32 %v389_v63, %v386_v25 }
 0x30b   :  { %v393_v4 = vadd.f32 %v392_v34, %v391_v3 }
 0x30d   :  { %395 = vrot.lane.b32.xlu2 %v393_v4, %s1101_s0 }
 0x367   :  { %v396_v6 = vpop.permute.xlu2 %395 }
 0x368   :  { %398 = vst.msk [vmem:[#allocation2 + $0x8] sm:$0xff] %vm268_vm2, %v396_v6  ;;  %945 = vmatmul.msk.f32.vlgmr.msra.gmra.mxu2 %vm268_vm2, %v396_v6  ;;  %946 = vmatmul.msk.f32.vlgmr.msra.gmra.mxu3 %vm268_vm2, %v396_v6 }
 0x369   :  { %598 = vmatpush.msra.mxu2 %v1194_v10  ;;  %618 = vmatpush.msra.mxu3 %v1199_v11 }
 0x36b   :  { %599 = vmatpush.msra.mxu2 %v1204_v12  ;;  %619 = vmatpush.msra.mxu3 %v1211_v13 }
 0x36d   :  { %600 = vmatpush.msra.mxu2 %v1216_v14  ;;  %620 = vmatpush.msra.mxu3 %v1221_v15 }
 0x36f   :  { %601 = vmatpush.msra.mxu2 %v1233_v17  ;;  %621 = vmatpush.msra.mxu3 %v1242_v18 }
 0x371   :  { %602 = vmatpush.msra.mxu2 %v1247_v19  ;;  %622 = vmatpush.msra.mxu3 %v1256_v20 }
 0x373   :  { %603 = vmatpush.msra.mxu2 %v1263_v21  ;;  %623 = vmatpush.msra.mxu3 %v1269_v22 }
 0x375   :  { %604 = vmatpush.msra.mxu2 %v1276_v23  ;;  %624 = vmatpush.msra.mxu3 %v1283_v24 }
 0x377   :  { %605 = vmatpush.msra.mxu2 %v1312_v28  ;;  %625 = vmatpush.msra.mxu3 %v1317_v29 }
 0x3eb   :  { %v418_v27 = vpop.f32.mrf.mxu2  ;;  %v438_v49 = vpop.f32.mrf.mxu3 }
 0x3ec   :  { %v419_v61 = vadd.f32 %v418_v27, %v1481_v38  ;;  %v439_v53 = vadd.f32 %v438_v49, %v1488_v56 }
 0x3ee   :  { %v441_v35 = vadd.f32 %v419_v61, %v225_v9 }
 0x3f0   :  { %v442_v40 = vmul.f32 0.5, %v441_v35 }
 0x3f2   :  { %976 = vtanh.f32 %v442_v40 }
 0x3f8   :  { %v977_v47 = vpop.eup %976 }
 0x3f9   :  { %v444_v36 = vadd.f32 1.0, %v977_v47 }
 0x3fb   :  { %v445_v52 = vmul.f32 0.5, %v444_v36 }
 0x3fd   :  { %v446_v54 = vmul.f32 %v445_v52, %v439_v53  ;;  %v449_v9 = vsub.f32 1.0, %v445_v52  ;;  %v455_v3 = vmul.f32 %v445_v52, %v393_v4 }
 0x3ff   :  { %v447_v25 = vadd.f32 %v446_v54, %v226_v1 }
 0x401   :  { %978 = vtanh.f32 %v447_v25 }
 0x407   :  { %v979_v63 = vpop.eup %978 }
 0x408   :  { %451 = vrot.lane.b32.xlu0 %v979_v63, %s1101_s0 }
 0x47a   :  { %v452_v34 = vpop.permute.xlu0 %451 }
 0x47b   :  { %v454_v6 = vmul.f32 %v452_v34, %v449_v9 }
 0x47d   :  { %v456_v27 = vadd.f32 %v455_v3, %v454_v6 }
 0x47f   :  { %458 = vrot.lane.b32.xlu1 %v456_v27, %s1101_s0 }
 0x4f1   :  { %v459_v61 = vpop.permute.xlu1 %458 }
 0x4f2   :  { %461 = vst.msk [vmem:[#allocation2 + $0x10] sm:$0xff] %vm268_vm2, %v459_v61  ;;  %947 = vmatmul.msk.f32.vlgmr.msrb.gmra.mxu2 %vm268_vm2, %v459_v61  ;;  %948 = vmatmul.msk.f32.vlgmr.msrb.gmra.mxu3 %vm268_vm2, %v459_v61 }
 0x4f3   :  { %724 = vmatpush.msrb.mxu2 %v1194_v10  ;;  %744 = vmatpush.msrb.mxu3 %v1199_v11 }
 0x4f5   :  { %725 = vmatpush.msrb.mxu2 %v1204_v12  ;;  %745 = vmatpush.msrb.mxu3 %v1211_v13 }
 0x4f7   :  { %726 = vmatpush.msrb.mxu2 %v1216_v14  ;;  %746 = vmatpush.msrb.mxu3 %v1221_v15 }
 0x4f9   :  { %727 = vmatpush.msrb.mxu2 %v1233_v17  ;;  %747 = vmatpush.msrb.mxu3 %v1242_v18  ;;  %v785_v45 = vld [vmem:[#allocation2 + $0x10] sm:$0xff] }
 0x4fb   :  { %728 = vmatpush.msrb.mxu2 %v1247_v19  ;;  %748 = vmatpush.msrb.mxu3 %v1256_v20 }
 0x4fd   :  { %729 = vmatpush.msrb.mxu2 %v1263_v21  ;;  %749 = vmatpush.msrb.mxu3 %v1269_v22 }
 0x4ff   :  { %730 = vmatpush.msrb.mxu2 %v1276_v23  ;;  %750 = vmatpush.msrb.mxu3 %v1283_v24 }
 0x501   :  { %731 = vmatpush.msrb.mxu2 %v1312_v28  ;;  %751 = vmatpush.msrb.mxu3 %v1317_v29 }
 0x575   :  { %v481_v10 = vpop.f32.mrf.mxu2  ;;  %v501_v15 = vpop.f32.mrf.mxu3 }
 0x576   :  { %v482_v11 = vadd.f32 %v481_v10, %v1481_v38  ;;  %v502_v19 = vadd.f32 %v501_v15, %v1488_v56 }
 0x578   :  { %v504_v12 = vadd.f32 %v482_v11, %v227_v44 }
 0x57a   :  { %v505_v13 = vmul.f32 0.5, %v504_v12 }
 0x57c   :  { %980 = vtanh.f32 %v505_v13 }
 0x582   :  { %v981_v14 = vpop.eup %980 }
 0x583   :  { %v507_v17 = vadd.f32 1.0, %v981_v14 }
 0x585   :  { %v508_v18 = vmul.f32 0.5, %v507_v17 }
 0x587   :  { %v509_v20 = vmul.f32 %v508_v18, %v502_v19  ;;  %v512_v23 = vsub.f32 1.0, %v508_v18  ;;  %v518_v28 = vmul.f32 %v508_v18, %v456_v27 }
 0x589   :  { %v510_v21 = vadd.f32 %v509_v20, %v228_v59 }
 0x58b   :  { %982 = vtanh.f32 %v510_v21 }
 0x591   :  { %v983_v22 = vpop.eup %982 }
 0x592   :  { %514 = vrot.lane.b32.xlu2 %v983_v22, %s1101_s0 }
 0x5ec   :  { %v515_v24 = vpop.permute.xlu2 %514 }
 0x5ed   :  { %v517_v29 = vmul.f32 %v515_v24, %v512_v23 }
 0x5ef   :  { %v519_v1 = vadd.f32 %v518_v28, %v517_v29 }
 0x5f1   :  { %521 = vrot.lane.b32.xlu0 %v519_v1, %s1101_s0 }
 0x663   :  { %v522_v44 = vpop.permute.xlu0 %521 }
 0x664   :  { %524 = vst.msk [vmem:[#allocation2 + $0x18] sm:$0xff] %vm268_vm2, %v522_v44  ;;  %949 = vmatmul.msk.f32.vlgmr.msrb.gmra.mxu0 %vm268_vm2, %v522_v44  ;;  %950 = vmatmul.msk.f32.vlgmr.msrb.gmra.mxu1 %vm268_vm2, %v522_v44 }
 0x66b   :  { %v786_v51 = vld [vmem:[#allocation2 + $0x18] sm:$0xff] }
 0x6e1   :  { %v544_v4 = vpop.f32.mrf.mxu0  ;;  %v564_v49 = vpop.f32.mrf.mxu1 }
 0x6e2   :  { %v545_v59 = vadd.f32 %v544_v4, %v1481_v38  ;;  %v565_v53 = vadd.f32 %v564_v49, %v1488_v56 }
 0x6e4   :  { %v567_v35 = vadd.f32 %v545_v59, %v229_v46 }
 0x6e6   :  { %v568_v40 = vmul.f32 0.5, %v567_v35 }
 0x6e8   :  { %984 = vtanh.f32 %v568_v40 }
 0x6ee   :  { %v985_v47 = vpop.eup %984 }
 0x6ef   :  { %v570_v36 = vadd.f32 1.0, %v985_v47 }
 0x6f1   :  { %v571_v52 = vmul.f32 0.5, %v570_v36 }
 0x6f3   :  { %v572_v54 = vmul.f32 %v571_v52, %v565_v53  ;;  %v575_v48 = vsub.f32 1.0, %v571_v52  ;;  %v581_v46 = vmul.f32 %v571_v52, %v519_v1 }
 0x6f5   :  { %v573_v25 = vadd.f32 %v572_v54, %v230_v60 }
 0x6f7   :  { %986 = vtanh.f32 %v573_v25  ;;  %v1684_v25 = vld [vmem:[%s1804_s6] ss:$0 sm:$0xff] }
 0x6fd   :  { %v987_v63 = vpop.eup %986 }
 0x6fe   :  { %577 = vrot.lane.b32.xlu1 %v987_v63, %s1101_s0 }
 0x770   :  { %v578_v55 = vpop.permute.xlu1 %577 }
 0x771   :  { %v580_v9 = vmul.f32 %v578_v55, %v575_v48 }
 0x773   :  { %v582_v34 = vadd.f32 %v581_v46, %v580_v9  ;;  %v1703_v9 = vld [vmem:[#allocation3] ss:$0 sm:$0xff] }
 0x775   :  { %584 = vrot.lane.b32.xlu2 %v582_v34, %s1101_s0 }
 0x7cf   :  { %v585_v3 = vpop.permute.xlu2 %584 }
 0x7d0   :  { %587 = vst.msk [vmem:[#allocation2 + $0x20] sm:$0xff] %vm268_vm2, %v585_v3  ;;  %951 = vmatmul.msk.f32.vlgmr.msra.gmra.mxu2 %vm268_vm2, %v585_v3  ;;  %952 = vmatmul.msk.f32.vlgmr.msra.gmra.mxu3 %vm268_vm2, %v585_v3 }
 0x7d7   :  { %v787_v57 = vld [vmem:[#allocation2 + $0x20] sm:$0xff] }
 0x7d8   :  { %v796_v60 = vsel %vm791_vm5, %v787_v57, %v786_v51  ;;  %v1621_v6 = vsel %vm791_vm5, %v786_v51, %v787_v57 }
 0x7d9   :  { %804 = vst.msk [vmem:[%s1806_s8 + $0x20] sm:$0xff] %vm268_vm2, %v796_v60  ;;  %v816_v63 = vmul.f32 %v1684_v25, %v796_v60 }
 0x7da   :  { %803 = vst.msk [vmem:[%s1806_s8 + $0x18] sm:$0xff] %vm268_vm2, %v1621_v6 }
 0x7db   :  { %v832_v41 = vsel %vm268_vm2, %v816_v63, 0.0 }
 0x853   :  { %v607_v27 = vpop.f32.mrf.mxu2  ;;  %v627_v13 = vpop.f32.mrf.mxu3 }
 0x854   :  { %v608_v61 = vadd.f32 %v607_v27, %v1481_v38  ;;  %v628_v17 = vadd.f32 %v627_v13, %v1488_v56 }
 0x856   :  { %v630_v10 = vadd.f32 %v608_v61, %v231_v16 }
 0x858   :  { %v631_v11 = vmul.f32 0.5, %v630_v10 }
 0x85a   :  { %988 = vtanh.f32 %v631_v11 }
 0x860   :  { %v989_v12 = vpop.eup %988 }
 0x861   :  { %v633_v14 = vadd.f32 1.0, %v989_v12 }
 0x863   :  { %v634_v15 = vmul.f32 0.5, %v633_v14 }
 0x865   :  { %v635_v18 = vmul.f32 %v634_v15, %v628_v17  ;;  %v638_v43 = vsub.f32 1.0, %v634_v15  ;;  %v644_v16 = vmul.f32 %v634_v15, %v582_v34 }
 0x867   :  { %v636_v19 = vadd.f32 %v635_v18, %v232_v2 }
 0x869   :  { %990 = vtanh.f32 %v636_v19 }
 0x86f   :  { %v991_v20 = vpop.eup %990 }
 0x870   :  { %640 = vrot.lane.b32.xlu0 %v991_v20, %s1101_s0 }
 0x8e2   :  { %v641_v62 = vpop.permute.xlu0 %640 }
 0x8e3   :  { %v643_v21 = vmul.f32 %v641_v62, %v638_v43 }
 0x8e5   :  { %v645_v22 = vadd.f32 %v644_v16, %v643_v21 }
 0x8e7   :  { %647 = vrot.lane.b32.xlu1 %v645_v22, %s1101_s0 }
 0x959   :  { %v648_v23 = vpop.permute.xlu1 %647 }
 0x95a   :  { %650 = vst.msk [vmem:[#allocation2 + $0x28] sm:$0xff] %vm268_vm2, %v648_v23  ;;  %953 = vmatmul.msk.f32.vlgmr.msra.gmra.mxu0 %vm268_vm2, %v648_v23  ;;  %954 = vmatmul.msk.f32.vlgmr.msra.gmra.mxu1 %vm268_vm2, %v648_v23 }
 0x961   :  { %v788_v0 = vld [vmem:[#allocation2 + $0x28] sm:$0xff] }
 0x962   :  { %v1651_v2 = vsel %vm791_vm5, %v788_v0, %v785_v45  ;;  %v1655_v24 = vsel %vm791_vm5, %v785_v45, %v788_v0  ;;  %v815_v0 = vmul.f32 %v1684_v25, %v1621_v6 }
 0x963   :  { %805 = vst.msk [vmem:[%s1806_s8 + $0x28] sm:$0xff] %vm268_vm2, %v1651_v2  ;;  %v814_v16 = vmul.f32 %v1684_v25, %v1655_v24 }
 0x964   :  { %802 = vst.msk [vmem:[%s1806_s8 + $0x10] sm:$0xff] %vm268_vm2, %v1655_v24 }
 0x965   :  { %v826_v23 = vsel %vm268_vm2, %v814_v16, 0.0 }
 0x9d7   :  { %v670_v28 = vpop.f32.mrf.mxu0  ;;  %v690_v59 = vpop.f32.mrf.mxu1 }
 0x9d8   :  { %v671_v29 = vadd.f32 %v670_v28, %v1481_v38  ;;  %v691_v47 = vadd.f32 %v690_v59, %v1488_v56 }
 0x9da   :  { %v693_v1 = vadd.f32 %v671_v29, %v233_v26  ;;  %v829_v29 = vsel %vm268_vm2, %v815_v0, 0.0 }
 0x9dc   :  { %v694_v44 = vmul.f32 0.5, %v693_v1 }
 0x9de   :  { %992 = vtanh.f32 %v694_v44 }
 0x9e4   :  { %v993_v4 = vpop.eup %992 }
 0x9e5   :  { %v696_v35 = vadd.f32 1.0, %v993_v4 }
 0x9e7   :  { %v697_v40 = vmul.f32 0.5, %v696_v35 }
 0x9e9   :  { %v698_v49 = vmul.f32 %v697_v40, %v691_v47  ;;  %v701_v39 = vsub.f32 1.0, %v697_v40  ;;  %v707_v26 = vmul.f32 %v697_v40, %v645_v22 }
 0x9eb   :  { %v699_v36 = vadd.f32 %v698_v49, %v234_v30  ;;  %v784_v30 = vld [vmem:[#allocation2 + $0x8] sm:$0xff] }
 0x9ed   :  { %994 = vtanh.f32 %v699_v36  ;;  %v783_v36 = vld [vmem:[#allocation2] sm:$0xff] }
 0x9f3   :  { %v995_v52 = vpop.eup %994 }
 0x9f4   :  { %703 = vrot.lane.b32.xlu2 %v995_v52, %s1101_s0 }
 0xa4e   :  { %v704_v5 = vpop.permute.xlu2 %703 }
 0xa4f   :  { %v706_v53 = vmul.f32 %v704_v5, %v701_v39 }
 0xa51   :  { %v708_v54 = vadd.f32 %v707_v26, %v706_v53 }
 0xa53   :  { %710 = vrot.lane.b32.xlu0 %v708_v54, %s1101_s0 }
 0xa7d   :  { %833 = vadd.xlane.f32.xlu0 %v832_v41 }
 0xac5   :  { %v711_v8 = vpop.permute.xlu0 %710 }
 0xac6   :  { %713 = vst.msk [vmem:[#allocation2 + $0x30] sm:$0xff] %vm268_vm2, %v711_v8  ;;  %955 = vmatmul.msk.f32.vlgmr.msrb.gmra.mxu2 %vm268_vm2, %v711_v8  ;;  %956 = vmatmul.msk.f32.vlgmr.msrb.gmra.mxu3 %vm268_vm2, %v711_v8 }
 0xacd   :  { %v789_v48 = vld [vmem:[#allocation2 + $0x30] sm:$0xff] }
 0xace   :  { %v793_v55 = vsel %vm791_vm5, %v784_v30, %v789_v48  ;;  %v798_v46 = vsel %vm791_vm5, %v789_v48, %v784_v30 }
 0xacf   :  { %801 = vst.msk [vmem:[%s1806_s8 + $0x8] sm:$0xff] %vm268_vm2, %v793_v55  ;;  %v813_v31 = vmul.f32 %v1684_v25, %v793_v55  ;;  %v818_v59 = vmul.f32 %v1684_v25, %v798_v46 }
 0xad0   :  { %806 = vst.msk [vmem:[%s1806_s8 + $0x30] sm:$0xff] %vm268_vm2, %v798_v46 }
 0xad1   :  { %v823_v37 = vsel %vm268_vm2, %v813_v31, 0.0  ;;  %v838_v6 = vsel %vm268_vm2, %v818_v59, 0.0 }
 0xaf0   :  { %v834_v34 = vpop.xlane.xlu0 %833 }
 0xaf1   :  { %v852_v3 = vadd.f32 %v1703_v9, %v834_v34 }
 0xaf3   :  { %v860_v51 = vmul.f32 0.5, %v852_v3 }
 0xaf5   :  { %996 = vtanh.f32 %v860_v51 }
 0xafb   :  { %v997_v57 = vpop.eup %996 }
 0xafc   :  { %v876_v60 = vadd.f32 1.0, %v997_v57 }
 0xafe   :  { %v884_v27 = vmul.f32 0.5, %v876_v60 }
 0xb00   :  { %893 = vst.msk [vmem:[%s1807_s9 + $0x20] sm:$0xff] %vm888_vm6, %v884_v27 }
 0xb49   :  { %v733_v61 = vpop.f32.mrf.mxu2  ;;  %v753_v14 = vpop.f32.mrf.mxu3 }
 0xb4a   :  { %v734_v10 = vadd.f32 %v733_v61, %v1481_v38  ;;  %v754_v18 = vadd.f32 %v753_v14, %v1488_v56  ;;  %v1813_v38 = vsel %vm1397_vm3, %v1460_v42, %v1456_v32 }
 0xb4c   :  { %v756_v11 = vadd.f32 %v734_v10, %v235_v33  ;;  %v817_v33 = vmul.f32 %v1684_v25, %v1651_v2 }
 0xb4e   :  { %v757_v12 = vmul.f32 0.5, %v756_v11  ;;  %v835_v56 = vsel %vm268_vm2, %v817_v33, 0.0 }
 0xb50   :  { %998 = vtanh.f32 %v757_v12 }
 0xb56   :  { %v999_v13 = vpop.eup %998 }
 0xb57   :  { %v759_v15 = vadd.f32 1.0, %v999_v13 }
 0xb59   :  { %v760_v17 = vmul.f32 0.5, %v759_v15 }
 0xb5b   :  { %v761_v19 = vmul.f32 %v760_v17, %v754_v18  ;;  %v764_v58 = vsub.f32 1.0, %v760_v17  ;;  %v770_v62 = vmul.f32 %v760_v17, %v708_v54 }
 0xb5d   :  { %v762_v20 = vadd.f32 %v761_v19, %v1813_v38 }
 0xb5f   :  { %1000 = vtanh.f32 %v762_v20 }
 0xb65   :  { %v1001_v7 = vpop.eup %1000 }
 0xb66   :  { %766 = vrot.lane.b32.xlu1 %v1001_v7, %s1101_s0 }
 0xb90   :  { %824 = vadd.xlane.f32.xlu1 %v823_v37 }
 0xb98   :  { %836 = vadd.xlane.f32.xlu1 %v835_v56 }
 0xbd8   :  { %v767_v43 = vpop.permute.xlu1 %766 }
 0xbd9   :  { %v769_v32 = vmul.f32 %v767_v43, %v764_v58 }
 0xbdb   :  { %v771_v42 = vadd.f32 %v770_v62, %v769_v32 }
 0xbdd   :  { %773 = vrot.lane.b32.xlu2 %v771_v42, %s1101_s0  ;;  %778 = vrot.lane.b32.xlu1 %v771_v42, %s1100_s2 }
 0xc03   :  { %v825_v21 = vpop.xlane.xlu1 %824 }
 0xc04   :  { %v849_v22 = vadd.f32 %v1703_v9, %v825_v21 }
 0xc06   :  { %v857_v45 = vmul.f32 0.5, %v849_v22  ;;  %827 = vadd.xlane.f32.xlu2 %v826_v23 }
 0xc08   :  { %1002 = vtanh.f32 %v857_v45 }
 0xc0b   :  { %v837_v2 = vpop.xlane.xlu1 %836 }
 0xc0c   :  { %v853_v28 = vadd.f32 %v1703_v9, %v837_v2 }
 0xc0e   :  { %v1003_v1 = vpop.eup %1002  ;;  %v861_v44 = vmul.f32 0.5, %v853_v28  ;;  %830 = vadd.xlane.f32.xlu2 %v829_v29 }
 0xc0f   :  { %v873_v24 = vadd.f32 1.0, %v1003_v1 }
 0xc10   :  { %1004 = vtanh.f32 %v861_v44 }
 0xc11   :  { %v881_v4 = vmul.f32 0.5, %v873_v24 }
 0xc13   :  { %890 = vst.msk [vmem:[%s1807_s9 + $0x8] sm:$0xff] %vm888_vm6, %v881_v4 }
 0xc16   :  { %v1005_v35 = vpop.eup %1004  ;;  %839 = vadd.xlane.f32.xlu2 %v838_v6 }
 0xc17   :  { %v877_v40 = vadd.f32 1.0, %v1005_v35 }
 0xc19   :  { %v885_v47 = vmul.f32 0.5, %v877_v40 }
 0xc1b   :  { %894 = vst.msk [vmem:[%s1807_s9 + $0x28] sm:$0xff] %vm888_vm6, %v885_v47 }
 0xc37   :  { %v774_v49 = vpop.permute.xlu2 %773 }
 0xc38   :  { %776 = vst.msk [vmem:[#allocation2 + $0x38] sm:$0xff] %vm268_vm2, %v774_v49 }
 0xc39   :  { %777 = vst.msk [vmem:[#allocation9] sm:$0xff] %vm261_vm1, %v774_v49 }
 0xc3f   :  { %v790_v52 = vld [vmem:[#allocation2 + $0x38] sm:$0xff] }
 0xc40   :  { %v792_v39 = vsel %vm791_vm5, %v783_v36, %v790_v52  ;;  %v799_v5 = vsel %vm791_vm5, %v790_v52, %v783_v36 }
 0xc41   :  { %v812_v26 = vmul.f32 %v1684_v25, %v792_v39  ;;  %800 = vst.msk [vmem:[%s1806_s8] sm:$0xff] %vm268_vm2, %v792_v39  ;;  %v819_v54 = vmul.f32 %v1684_v25, %v799_v5 }
 0xc42   :  { %807 = vst.msk [vmem:[%s1806_s8 + $0x38] sm:$0xff] %vm268_vm2, %v799_v5 }
 0xc43   :  { %v820_v53 = vsel %vm268_vm2, %v812_v26, 0.0  ;;  %v841_v50 = vsel %vm268_vm2, %v819_v54, 0.0 }
 0xc44   :  { %821 = vadd.xlane.f32.xlu0 %v820_v53 }
 0xc4c   :  { %842 = vadd.xlane.f32.xlu0 %v841_v50 }
 0xc4f   :  { %v779_v63 = vpop.permute.xlu1 %778 }
 0xc50   :  { %782 = vst.msk [vmem:[#allocation9 + $0x8] sm:$0xff] %vm261_vm1, %v779_v63 }
 0xc51   :  { %913 = dma.vmem_to_hbm [thread:$0]  %s906_s16, 256, %s908_s18, [#allocation6], %s1095_s23, %s1095_s23, %s1096_s24  }
 0xc79   :  { %v828_v41 = vpop.xlane.xlu2 %827 }
 0xc7a   :  { %v850_v25 = vadd.f32 %v1703_v9, %v828_v41 }
 0xc7c   :  { %v858_v8 = vmul.f32 0.5, %v850_v25 }
 0xc7e   :  { %1006 = vtanh.f32 %v858_v8 }
 0xc81   :  { %v831_v30 = vpop.xlane.xlu2 %830 }
 0xc82   :  { %v851_v48 = vadd.f32 %v1703_v9, %v831_v30 }
 0xc84   :  { %v1007_v55 = vpop.eup %1006  ;;  %v859_v46 = vmul.f32 0.5, %v851_v48 }
 0xc85   :  { %v874_v34 = vadd.f32 1.0, %v1007_v55 }
 0xc86   :  { %1008 = vtanh.f32 %v859_v46 }
 0xc87   :  { %v882_v3 = vmul.f32 0.5, %v874_v34 }
 0xc89   :  { %891 = vst.msk [vmem:[%s1807_s9 + $0x10] sm:$0xff] %vm888_vm6, %v882_v3  ;;  %v840_v51 = vpop.xlane.xlu2 %839 }
 0xc8a   :  { %v854_v57 = vadd.f32 %v1703_v9, %v840_v51 }
 0xc8c   :  { %v1009_v60 = vpop.eup %1008  ;;  %v862_v27 = vmul.f32 0.5, %v854_v57 }
 0xc8d   :  { %v875_v61 = vadd.f32 1.0, %v1009_v60 }
 0xc8e   :  { %1010 = vtanh.f32 %v862_v27 }
 0xc8f   :  { %v883_v10 = vmul.f32 0.5, %v875_v61 }
 0xc91   :  { %892 = vst.msk [vmem:[%s1807_s9 + $0x18] sm:$0xff] %vm888_vm6, %v883_v10 }
 0xc94   :  { %v1011_v11 = vpop.eup %1010 }
 0xc95   :  { %v878_v12 = vadd.f32 1.0, %v1011_v11 }
 0xc97   :  { %v886_v13 = vmul.f32 0.5, %v878_v12 }
 0xc99   :  { %895 = vst.msk [vmem:[%s1807_s9 + $0x30] sm:$0xff] %vm888_vm6, %v886_v13 }
 0xcb7   :  { %v822_v14 = vpop.xlane.xlu0 %821 }
 0xcb8   :  { %v848_v15 = vadd.f32 %v1703_v9, %v822_v14 }
 0xcba   :  { %v856_v17 = vmul.f32 0.5, %v848_v15 }
 0xcbc   :  { %1012 = vtanh.f32 %v856_v17 }
 0xcbf   :  { %v843_v18 = vpop.xlane.xlu0 %842 }
 0xcc0   :  { %v855_v19 = vadd.f32 %v1703_v9, %v843_v18 }
 0xcc2   :  { %v1013_v38 = vpop.eup %1012  ;;  %v863_v20 = vmul.f32 0.5, %v855_v19 }
 0xcc3   :  { %v872_v7 = vadd.f32 1.0, %v1013_v38 }
 0xcc4   :  { %1014 = vtanh.f32 %v863_v20 }
 0xcc5   :  { %v880_v31 = vmul.f32 0.5, %v872_v7 }
 0xcc7   :  { %889 = vst.msk [vmem:[%s1807_s9] sm:$0xff] %vm888_vm6, %v880_v31 }
 0xcca   :  { %v1015_v37 = vpop.eup %1014 }
 0xccb   :  { %v879_v33 = vadd.f32 1.0, %v1015_v37 }
 0xccd   :  { %v887_v56 = vmul.f32 0.5, %v879_v33 }
 0xccf   :  { %896 = vst.msk [vmem:[%s1807_s9 + $0x38] sm:$0xff] %vm888_vm6, %v887_v56 }
 0xcd0   :  { %1092 = dma.done.wait [#allocation6], 256  }
 0xcd1   :  { %1093 = vsyncadd [#allocation6], 4294967040 }
 0xcd2   :  { %922 = vsyncpa [#allocation5], 1 }
 0xcd3   :  { %923 = vsyncpa [#allocation8], 1 }
 0xcd4   :  { %924 = vsyncpa [#allocation6], 1 }

</bundles_post_ra>
